<compile_context>
chip_gen: v7x
topology: tpu7x:2x2x1
jax: 0.10.0
libtpu: 0.0.40
codegen_flags: <defaults>
</compile_context>

<pallas_src>
import functools

import numpy as np
import jax
import jax.numpy as jnp
from jax.experimental import pallas as pl
from jax.experimental.pallas import tpu as pltpu


def attention_kernel(x_ref, gamma_ref, beta_ref, wqkv_ref, wout_ref, bout_ref,
                     pre_ref, mix_post_ref, o_ref,
                     q_scr, k_scr, v_scr, attn_scr, ho_scr,
                     *, heads, dim_head, eps):
    n = x_ref.shape[1]
    inner = heads * dim_head
    tq = attn_scr.shape[1]
    j = pl.program_id(1)

    # ---- LayerNorm + fused lane-dense QKV, once per batch element ----------
    @pl.when(j == 0)
    def _ln_qkv():
        x = x_ref[0].astype(jnp.float32)                      # (n, dim)
        mean = jnp.mean(x, axis=-1, keepdims=True)
        xc = x - mean
        var = jnp.mean(xc * xc, axis=-1, keepdims=True)
        xn = xc * jax.lax.rsqrt(var + eps)
        xn = xn * gamma_ref[...] + beta_ref[...]              # (1, dim) broadcast
        # one (n, dim) @ (dim, 3*inner) MXU matmul, f32 accumulation
        qkv = jnp.dot(xn.astype(jnp.bfloat16), wqkv_ref[...],
                      preferred_element_type=jnp.float32)     # (n, 3*inner) f32
        q_scr[...] = qkv[:, :inner].astype(jnp.bfloat16)
        k_scr[...] = qkv[:, inner:2 * inner].astype(jnp.bfloat16)
        for h in range(heads):                                # head-major V, written once
            v_scr[h] = qkv[:, 2 * inner + h * dim_head:
                              2 * inner + (h + 1) * dim_head].astype(jnp.bfloat16)

    # ---- per-tile attention --------------------------------------------------
    row = pl.multiple_of(j * tq, tq)
    q_tile = q_scr[pl.ds(row, tq), :].astype(jnp.float32)     # (tq, inner)
    k_all = k_scr[...]                                        # (n, inner) bf16
    pre = pre_ref[...]                                        # (heads, inner) f32

    dn = (((1,), (1,)), ((), ()))                             # contract over `inner`
    for g in range(heads):
        # fused pre-softmax mixing: scale Q columns by scale*mix_pre[:, g]
        qg = (q_tile * pre[g:g + 1, :]).astype(jnp.bfloat16)
        dots = jax.lax.dot_general(qg, k_all, dn,
                                   preferred_element_type=jnp.float32)  # (tq, n)
        dots = dots - jnp.max(dots, axis=-1, keepdims=True)
        e = jnp.exp(dots)
        s = jnp.sum(e, axis=-1, keepdims=True)
        attn_scr[g] = (e * pl.reciprocal(s, approx=True)).astype(jnp.bfloat16)

    # ---- post-softmax mixing (f32 accumulation) + P @ V, per output head ----
    for g in range(heads):
        acc = attn_scr[0].astype(jnp.float32) * mix_post_ref[0, g]
        for h in range(1, heads):
            acc = acc + attn_scr[h].astype(jnp.float32) * mix_post_ref[h, g]
        pv = jnp.dot(acc.astype(jnp.bfloat16), v_scr[g],
                     preferred_element_type=jnp.float32)       # (tq, dim_head)
        ho_scr[:, g * dim_head:(g + 1) * dim_head] = pv.astype(jnp.bfloat16)

    # ---- single lane-dense output projection (+ bias once) ------------------
    out = jnp.dot(ho_scr[...], wout_ref[...],
                  preferred_element_type=jnp.float32) + bout_ref[...]
    o_ref[0] = out.astype(o_ref.dtype)


def _vmem_limit_bytes():
    """Per-generation VMEM budget: ~52 MiB on v7x (64 MiB), 100 MiB on v5e/v6e."""
    try:
        cap = pltpu.get_tpu_info().vmem_capacity_bytes
    except Exception:
        cap = 64 * 1024 * 1024
    return min(int(cap * 0.82), 100 * 1024 * 1024)


def _pick_tq(n, heads, vmem_limit_bytes):
    """Largest query tile keeping the (heads, tq, n) bf16 prob scratch in budget."""
    if n <= 256:
        return n
    budget = max(vmem_limit_bytes // 4, 4 * 1024 * 1024)
    cap = min(512, max(64, budget // (heads * n * 2)))
    for t in range(int(cap) - int(cap) % 64, 63, -64):
        if n % t == 0:
            return t
    # TODO(synk): pad n to a multiple of the tile instead of falling back.
    return n


def attention_pallas(x, params, heads, dim_head):
    b, n, dim = x.shape
    inner = heads * dim_head
    scale = dim_head ** (-0.5)

    vmem_limit = _vmem_limit_bytes()
    tq = _pick_tq(n, heads, vmem_limit)
    assert n % tq == 0

    # ---- plain-JAX glue: lane-dense bf16 weights, scale folded into mix_pre ----
    gamma = params['gamma'].reshape(1, dim).astype(jnp.float32)
    beta = params['beta'].reshape(1, dim).astype(jnp.float32)
    # columns: [ Wq (inner) | Wk (inner) | Wv (inner) ]
    wqkv = jnp.concatenate([params['wq'], params['wkv']],
                           axis=-1).astype(jnp.bfloat16)       # (dim, 3*inner)
    wout = params['wout'].astype(jnp.bfloat16)                 # (inner, dim)
    bout = params['bout'].reshape(1, dim).astype(jnp.float32)
    # pre_cols[g, h*dim_head + d] = scale * mix_pre[h, g]
    pre_cols = jnp.repeat(params['mix_pre'].T * scale,
                          dim_head, axis=1).astype(jnp.float32)  # (heads, inner)
    mix_post = params['mix_post'].astype(jnp.float32)

    kernel = functools.partial(attention_kernel,
                               heads=heads, dim_head=dim_head, eps=1e-5)

    return pl.pallas_call(
        kernel,
        out_shape=jax.ShapeDtypeStruct((b, n, dim), x.dtype),
        grid_spec=pltpu.PrefetchScalarGridSpec(
            num_scalar_prefetch=0,
            grid=(b, n // tq),
            in_specs=[
                pl.BlockSpec((1, n, dim), lambda i, j: (i, 0, 0)),        # x
                pl.BlockSpec((1, dim), lambda i, j: (0, 0)),              # gamma
                pl.BlockSpec((1, dim), lambda i, j: (0, 0)),              # beta
                pl.BlockSpec((dim, 3 * inner), lambda i, j: (0, 0)),      # wqkv
                pl.BlockSpec((inner, dim), lambda i, j: (0, 0)),          # wout
                pl.BlockSpec((1, dim), lambda i, j: (0, 0)),              # bout
                pl.BlockSpec((heads, inner), lambda i, j: (0, 0)),        # pre_cols
                pl.BlockSpec(memory_space=pltpu.MemorySpace.SMEM),        # mix_post
            ],
            out_specs=pl.BlockSpec((1, tq, dim), lambda i, j: (i, j, 0)),
            scratch_shapes=[
                pltpu.VMEM((n, inner), jnp.bfloat16),                     # Q
                pltpu.VMEM((n, inner), jnp.bfloat16),                     # K
                pltpu.VMEM((heads, n, dim_head), jnp.bfloat16),           # V (head-major)
                pltpu.VMEM((heads, tq, n), jnp.bfloat16),                 # probs
                pltpu.VMEM((tq, inner), jnp.bfloat16),                    # head outputs
            ],
        ),
        compiler_params=pltpu.CompilerParams(
            dimension_semantics=("parallel", "arbitrary"),
            vmem_limit_bytes=vmem_limit,
        ),
    )(x, gamma, beta, wqkv, wout, bout, pre_cols, mix_post)


def attention_reference(x, params, heads, dim_head):
    """Pure-JAX (f32) mirror of the PyTorch forward (mask=None, dropout=0)."""
    inner = heads * dim_head
    mean = x.mean(-1, keepdims=True)
    var = ((x - mean) ** 2).mean(-1, keepdims=True)
    xn = (x - mean) / jnp.sqrt(var + 1e-5) * params['gamma'] + params['beta']
    q = xn @ params['wq']
    kv = xn @ params['wkv']
    k, v = kv[..., :inner], kv[..., inner:]

    def split(t):
        b, n, _ = t.shape
        return t.reshape(b, n, heads, dim_head).transpose(0, 2, 1, 3)

    q, k, v = split(q), split(k), split(v)
    dots = jnp.einsum('bhid,bhjd->bhij', q, k) * (dim_head ** (-0.5))
    dots = jnp.einsum('bhij,hg->bgij', dots, params['mix_pre'])
    attn = jax.nn.softmax(dots, axis=-1)
    attn = jnp.einsum('bhij,hg->bgij', attn, params['mix_post'])
    out = jnp.einsum('bhij,bhjd->bhid', attn, v)
    b, _, n, _ = out.shape
    out = out.transpose(0, 2, 1, 3).reshape(b, n, inner)
    return out @ params['wout'] + params['bout']


if __name__ == "__main__":
    key = jax.random.PRNGKey(0)
    b, n, dim, heads, dim_head = 2, 8, 32, 4, 8
    inner = heads * dim_head

    ks = jax.random.split(key, 9)
    x = jax.random.normal(ks[0], (b, n, dim), jnp.float32)
    params = dict(
        gamma=1.0 + 0.1 * jax.random.normal(ks[1], (dim,), jnp.float32),
        beta=0.1 * jax.random.normal(ks[2], (dim,), jnp.float32),
        wq=0.1 * jax.random.normal(ks[3], (dim, inner), jnp.float32),
        wkv=0.1 * jax.random.normal(ks[4], (dim, 2 * inner), jnp.float32),
        mix_pre=jax.random.normal(ks[5], (heads, heads), jnp.float32),
        mix_post=jax.random.normal(ks[6], (heads, heads), jnp.float32),
        wout=0.1 * jax.random.normal(ks[7], (inner, dim), jnp.float32),
        bout=0.1 * jax.random.normal(ks[8], (dim,), jnp.float32),
    )

    out = attention_pallas(x, params, heads, dim_head)
    out = jax.block_until_ready(out)

    ref = attention_reference(x, params, heads, dim_head)
    # matmul operands / prob storage are bf16 (f32 accumulation) -> looser tol
    np.testing.assert_allclose(np.asarray(out), np.asarray(ref),
                               rtol=2e-2, atol=2e-2)
    print("KERNEL_OK")
</pallas_src>

<mosaic_0001>
module attributes {stable_mosaic.version = 11 : i64} {
  func.func @attention_kernel(%arg0: i32, %arg1: i32, %arg2: memref<1x8x32xf32, #tpu.memory_space<vmem>>, %arg3: memref<1x32xf32, #tpu.memory_space<vmem>>, %arg4: memref<1x32xf32, #tpu.memory_space<vmem>>, %arg5: memref<32x96xbf16, #tpu.memory_space<vmem>>, %arg6: memref<32x32xbf16, #tpu.memory_space<vmem>>, %arg7: memref<1x32xf32, #tpu.memory_space<vmem>>, %arg8: memref<4x32xf32, #tpu.memory_space<vmem>>, %arg9: memref<4x4xf32, #tpu.memory_space<smem>>, %arg10: memref<1x8x32xf32, #tpu.memory_space<vmem>>, %arg11: memref<8x32xbf16, #tpu.memory_space<vmem>>, %arg12: memref<8x32xbf16, #tpu.memory_space<vmem>>, %arg13: memref<4x8x8xbf16, #tpu.memory_space<vmem>>, %arg14: memref<4x8x8xbf16, #tpu.memory_space<vmem>>, %arg15: memref<8x32xbf16, #tpu.memory_space<vmem>>) attributes {dimension_semantics = [#tpu.dimension_semantics<parallel>, #tpu.dimension_semantics<arbitrary>], iteration_bounds = array<i64: 2, 1>, scalar_prefetch = 0 : i64, scratch_operands = 5 : i64, tpu.core_type = #tpu.core_type<tc>, window_params = [{transform_indices = @transform_0, window_bounds = array<i64: 1, 8, 32>}, {pipeline_mode = #tpu.pipeline_mode<synchronous>, transform_indices = @transform_1, window_bounds = array<i64: 1, 32>}, {pipeline_mode = #tpu.pipeline_mode<synchronous>, transform_indices = @transform_2, window_bounds = array<i64: 1, 32>}, {pipeline_mode = #tpu.pipeline_mode<synchronous>, transform_indices = @transform_3, window_bounds = array<i64: 32, 96>}, {pipeline_mode = #tpu.pipeline_mode<synchronous>, transform_indices = @transform_4, window_bounds = array<i64: 32, 32>}, {pipeline_mode = #tpu.pipeline_mode<synchronous>, transform_indices = @transform_5, window_bounds = array<i64: 1, 32>}, {pipeline_mode = #tpu.pipeline_mode<synchronous>, transform_indices = @transform_6, window_bounds = array<i64: 4, 32>}, {transform_indices = @transform_7, window_bounds = array<i64: 4, 4>}, {transform_indices = @transform_8, window_bounds = array<i64: 1, 8, 32>}]} {
    %c0_i32 = arith.constant 0 : i32
    %0 = arith.cmpi eq, %arg1, %c0_i32 : i32
    %1 = arith.extui %0 : i1 to i32
    %c0_i32_0 = arith.constant 0 : i32
    %2 = arith.cmpi ne, %1, %c0_i32_0 : i32
    scf.if %2 {
      %c0_136 = arith.constant 0 : index
      %c0_137 = arith.constant 0 : index
      %c0_138 = arith.constant 0 : index
      %227 = vector.load %arg2[%c0_136, %c0_137, %c0_138] : memref<1x8x32xf32, #tpu.memory_space<vmem>>, vector<1x8x32xf32>
      %228 = vector.shape_cast %227 : vector<1x8x32xf32> to vector<8x32xf32>
      %cst_139 = arith.constant dense<0.000000e+00> : vector<8xf32>
      %229 = vector.multi_reduction <add>, %228, %cst_139 [1] : vector<8x32xf32> to vector<8xf32>
      %230 = vector.shape_cast %229 : vector<8xf32> to vector<8x1xf32>
      %cst_140 = arith.constant 3.200000e+01 : f32
      %231 = vector.broadcast %cst_140 : f32 to vector<8x1xf32>
      %232 = arith.divf %230, %231 : vector<8x1xf32>
      %233 = vector.broadcast %232 : vector<8x1xf32> to vector<8x32xf32>
      %234 = arith.subf %228, %233 : vector<8x32xf32>
      %235 = arith.mulf %234, %234 : vector<8x32xf32>
      %cst_141 = arith.constant dense<0.000000e+00> : vector<8xf32>
      %236 = vector.multi_reduction <add>, %235, %cst_141 [1] : vector<8x32xf32> to vector<8xf32>
      %237 = vector.shape_cast %236 : vector<8xf32> to vector<8x1xf32>
      %cst_142 = arith.constant 3.200000e+01 : f32
      %238 = vector.broadcast %cst_142 : f32 to vector<8x1xf32>
      %239 = arith.divf %237, %238 : vector<8x1xf32>
      %cst_143 = arith.constant 9.99999974E-6 : f32
      %240 = vector.broadcast %cst_143 : f32 to vector<8x1xf32>
      %241 = arith.addf %239, %240 : vector<8x1xf32>
      %242 = math.rsqrt %241 : vector<8x1xf32>
      %243 = vector.broadcast %242 : vector<8x1xf32> to vector<8x32xf32>
      %244 = arith.mulf %234, %243 : vector<8x32xf32>
      %c0_144 = arith.constant 0 : index
      %c0_145 = arith.constant 0 : index
      %245 = vector.load %arg3[%c0_144, %c0_145] : memref<1x32xf32, #tpu.memory_space<vmem>>, vector<1x32xf32>
      %246 = vector.broadcast %245 : vector<1x32xf32> to vector<8x32xf32>
      %247 = arith.mulf %244, %246 : vector<8x32xf32>
      %c0_146 = arith.constant 0 : index
      %c0_147 = arith.constant 0 : index
      %248 = vector.load %arg4[%c0_146, %c0_147] : memref<1x32xf32, #tpu.memory_space<vmem>>, vector<1x32xf32>
      %249 = vector.broadcast %248 : vector<1x32xf32> to vector<8x32xf32>
      %250 = arith.addf %247, %249 : vector<8x32xf32>
      %251 = arith.truncf %250 : vector<8x32xf32> to vector<8x32xbf16>
      %c0_148 = arith.constant 0 : index
      %c0_149 = arith.constant 0 : index
      %252 = vector.load %arg5[%c0_148, %c0_149] : memref<32x96xbf16, #tpu.memory_space<vmem>>, vector<32x96xbf16>
      %cst_150 = arith.constant dense<0.000000e+00> : vector<8x96xf32>
      %253 = tpu.matmul %251, %252, %cst_150 {dimension_numbers = #tpu.dot_dimension_numbers<[1], [0], [0], [1], [0, 0, 1, 1], [], []>} : vector<8x32xbf16>, vector<32x96xbf16>, vector<8x96xf32> -> vector<8x96xf32>
      %254 = vector.extract_strided_slice %253 {offsets = [0, 0], sizes = [8, 32], strides = [1, 1]} : vector<8x96xf32> to vector<8x32xf32>
      %255 = arith.truncf %254 : vector<8x32xf32> to vector<8x32xbf16>
      %c0_151 = arith.constant 0 : index
      %c0_152 = arith.constant 0 : index
      %256 = vector.load %arg11[%c0_151, %c0_152] : memref<8x32xbf16, #tpu.memory_space<vmem>>, vector<8x32xbf16>
      tpu.vector_store %arg11[%c0_151, %c0_152], %255 {strides = array<i32>} : memref<8x32xbf16, #tpu.memory_space<vmem>>, vector<8x32xbf16>,
      %257 = vector.extract_strided_slice %253 {offsets = [0, 32], sizes = [8, 32], strides = [1, 1]} : vector<8x96xf32> to vector<8x32xf32>
      %258 = arith.truncf %257 : vector<8x32xf32> to vector<8x32xbf16>
      %c0_153 = arith.constant 0 : index
      %c0_154 = arith.constant 0 : index
      %259 = vector.load %arg12[%c0_153, %c0_154] : memref<8x32xbf16, #tpu.memory_space<vmem>>, vector<8x32xbf16>
      tpu.vector_store %arg12[%c0_153, %c0_154], %258 {strides = array<i32>} : memref<8x32xbf16, #tpu.memory_space<vmem>>, vector<8x32xbf16>,
      %260 = vector.extract_strided_slice %253 {offsets = [0, 64], sizes = [8, 8], strides = [1, 1]} : vector<8x96xf32> to vector<8x8xf32>
      %261 = arith.truncf %260 : vector<8x8xf32> to vector<8x8xbf16>
      %c0_155 = arith.constant 0 : index
      %c0_156 = arith.constant 0 : index
      %c0_157 = arith.constant 0 : index
      %262 = vector.load %arg13[%c0_155, %c0_156, %c0_157] : memref<4x8x8xbf16, #tpu.memory_space<vmem>>, vector<1x8x8xbf16>
      %263 = vector.shape_cast %262 : vector<1x8x8xbf16> to vector<8x8xbf16>
      %264 = vector.shape_cast %261 : vector<8x8xbf16> to vector<1x8x8xbf16>
      tpu.vector_store %arg13[%c0_155, %c0_156, %c0_157], %264 {strides = array<i32>} : memref<4x8x8xbf16, #tpu.memory_space<vmem>>, vector<1x8x8xbf16>,
      %265 = vector.extract_strided_slice %253 {offsets = [0, 72], sizes = [8, 8], strides = [1, 1]} : vector<8x96xf32> to vector<8x8xf32>
      %266 = arith.truncf %265 : vector<8x8xf32> to vector<8x8xbf16>
      %c1_158 = arith.constant 1 : index
      %c0_159 = arith.constant 0 : index
      %c0_160 = arith.constant 0 : index
      %267 = vector.load %arg13[%c1_158, %c0_159, %c0_160] : memref<4x8x8xbf16, #tpu.memory_space<vmem>>, vector<1x8x8xbf16>
      %268 = vector.shape_cast %267 : vector<1x8x8xbf16> to vector<8x8xbf16>
      %269 = vector.shape_cast %266 : vector<8x8xbf16> to vector<1x8x8xbf16>
      tpu.vector_store %arg13[%c1_158, %c0_159, %c0_160], %269 {strides = array<i32>} : memref<4x8x8xbf16, #tpu.memory_space<vmem>>, vector<1x8x8xbf16>,
      %270 = vector.extract_strided_slice %253 {offsets = [0, 80], sizes = [8, 8], strides = [1, 1]} : vector<8x96xf32> to vector<8x8xf32>
      %271 = arith.truncf %270 : vector<8x8xf32> to vector<8x8xbf16>
      %c2_161 = arith.constant 2 : index
      %c0_162 = arith.constant 0 : index
      %c0_163 = arith.constant 0 : index
      %272 = vector.load %arg13[%c2_161, %c0_162, %c0_163] : memref<4x8x8xbf16, #tpu.memory_space<vmem>>, vector<1x8x8xbf16>
      %273 = vector.shape_cast %272 : vector<1x8x8xbf16> to vector<8x8xbf16>
      %274 = vector.shape_cast %271 : vector<8x8xbf16> to vector<1x8x8xbf16>
      tpu.vector_store %arg13[%c2_161, %c0_162, %c0_163], %274 {strides = array<i32>} : memref<4x8x8xbf16, #tpu.memory_space<vmem>>, vector<1x8x8xbf16>,
      %275 = vector.extract_strided_slice %253 {offsets = [0, 88], sizes = [8, 8], strides = [1, 1]} : vector<8x96xf32> to vector<8x8xf32>
      %276 = arith.truncf %275 : vector<8x8xf32> to vector<8x8xbf16>
      %c3_164 = arith.constant 3 : index
      %c0_165 = arith.constant 0 : index
      %c0_166 = arith.constant 0 : index
      %277 = vector.load %arg13[%c3_164, %c0_165, %c0_166] : memref<4x8x8xbf16, #tpu.memory_space<vmem>>, vector<1x8x8xbf16>
      %278 = vector.shape_cast %277 : vector<1x8x8xbf16> to vector<8x8xbf16>
      %279 = vector.shape_cast %276 : vector<8x8xbf16> to vector<1x8x8xbf16>
      tpu.vector_store %arg13[%c3_164, %c0_165, %c0_166], %279 {strides = array<i32>} : memref<4x8x8xbf16, #tpu.memory_space<vmem>>, vector<1x8x8xbf16>,
    } else {
    }
    %c8_i32 = arith.constant 8 : i32
    %3 = arith.muli %arg1, %c8_i32 : i32
    %4 = tpu.assume_multiple %3, 8 : i32
    %5 = arith.index_cast %4 : i32 to index
    %c0 = arith.constant 0 : index
    %6 = vector.load %arg11[%5, %c0] : memref<8x32xbf16, #tpu.memory_space<vmem>>, vector<8x32xbf16>
    %7 = arith.extf %6 : vector<8x32xbf16> to vector<8x32xf32>
    %c0_1 = arith.constant 0 : index
    %c0_2 = arith.constant 0 : index
    %8 = vector.load %arg12[%c0_1, %c0_2] : memref<8x32xbf16, #tpu.memory_space<vmem>>, vector<8x32xbf16>
    %c0_3 = arith.constant 0 : index
    %c0_4 = arith.constant 0 : index
    %9 = vector.load %arg8[%c0_3, %c0_4] : memref<4x32xf32, #tpu.memory_space<vmem>>, vector<4x32xf32>
    %10 = vector.extract_strided_slice %9 {offsets = [0, 0], sizes = [1, 32], strides = [1, 1]} : vector<4x32xf32> to vector<1x32xf32>
    %11 = vector.broadcast %10 : vector<1x32xf32> to vector<8x32xf32>
    %12 = arith.mulf %7, %11 : vector<8x32xf32>
    %13 = arith.truncf %12 : vector<8x32xf32> to vector<8x32xbf16>
    %cst = arith.constant dense<0.000000e+00> : vector<8x8xf32>
    %14 = tpu.matmul %13, %8, %cst {dimension_numbers = #tpu.dot_dimension_numbers<[1], [1], [0], [0], [0, 0, 1, 0], [], []>} : vector<8x32xbf16>, vector<8x32xbf16>, vector<8x8xf32> -> vector<8x8xf32>
    %cst_5 = arith.constant dense<0xFF800000> : vector<8xf32>
    %15 = vector.multi_reduction <maximumf>, %14, %cst_5 [1] : vector<8x8xf32> to vector<8xf32>
    %16 = vector.shape_cast %15 : vector<8xf32> to vector<8x1xf32>
    %17 = vector.broadcast %16 : vector<8x1xf32> to vector<8x8xf32>
    %18 = arith.subf %14, %17 : vector<8x8xf32>
    %19 = math.exp %18 : vector<8x8xf32>
    %cst_6 = arith.constant dense<0.000000e+00> : vector<8xf32>
    %20 = vector.multi_reduction <add>, %19, %cst_6 [1] : vector<8x8xf32> to vector<8xf32>
    %21 = vector.shape_cast %20 : vector<8xf32> to vector<8x1xf32>
    %22 = tpu.reciprocal %21 {approx = true} : vector<8x1xf32> -> vector<8x1xf32>
    %23 = vector.broadcast %22 : vector<8x1xf32> to vector<8x8xf32>
    %24 = arith.mulf %19, %23 : vector<8x8xf32>
    %25 = arith.truncf %24 : vector<8x8xf32> to vector<8x8xbf16>
    %c0_7 = arith.constant 0 : index
    %c0_8 = arith.constant 0 : index
    %c0_9 = arith.constant 0 : index
    %26 = vector.load %arg14[%c0_7, %c0_8, %c0_9] : memref<4x8x8xbf16, #tpu.memory_space<vmem>>, vector<1x8x8xbf16>
    %27 = vector.shape_cast %26 : vector<1x8x8xbf16> to vector<8x8xbf16>
    %28 = vector.shape_cast %25 : vector<8x8xbf16> to vector<1x8x8xbf16>
    tpu.vector_store %arg14[%c0_7, %c0_8, %c0_9], %28 {strides = array<i32>} : memref<4x8x8xbf16, #tpu.memory_space<vmem>>, vector<1x8x8xbf16>,
    %29 = vector.extract_strided_slice %9 {offsets = [1, 0], sizes = [1, 32], strides = [1, 1]} : vector<4x32xf32> to vector<1x32xf32>
    %30 = vector.broadcast %29 : vector<1x32xf32> to vector<8x32xf32>
    %31 = arith.mulf %7, %30 : vector<8x32xf32>
    %32 = arith.truncf %31 : vector<8x32xf32> to vector<8x32xbf16>
    %cst_10 = arith.constant dense<0.000000e+00> : vector<8x8xf32>
    %33 = tpu.matmul %32, %8, %cst_10 {dimension_numbers = #tpu.dot_dimension_numbers<[1], [1], [0], [0], [0, 0, 1, 0], [], []>} : vector<8x32xbf16>, vector<8x32xbf16>, vector<8x8xf32> -> vector<8x8xf32>
    %cst_11 = arith.constant dense<0xFF800000> : vector<8xf32>
    %34 = vector.multi_reduction <maximumf>, %33, %cst_11 [1] : vector<8x8xf32> to vector<8xf32>
    %35 = vector.shape_cast %34 : vector<8xf32> to vector<8x1xf32>
    %36 = vector.broadcast %35 : vector<8x1xf32> to vector<8x8xf32>
    %37 = arith.subf %33, %36 : vector<8x8xf32>
    %38 = math.exp %37 : vector<8x8xf32>
    %cst_12 = arith.constant dense<0.000000e+00> : vector<8xf32>
    %39 = vector.multi_reduction <add>, %38, %cst_12 [1] : vector<8x8xf32> to vector<8xf32>
    %40 = vector.shape_cast %39 : vector<8xf32> to vector<8x1xf32>
    %41 = tpu.reciprocal %40 {approx = true} : vector<8x1xf32> -> vector<8x1xf32>
    %42 = vector.broadcast %41 : vector<8x1xf32> to vector<8x8xf32>
    %43 = arith.mulf %38, %42 : vector<8x8xf32>
    %44 = arith.truncf %43 : vector<8x8xf32> to vector<8x8xbf16>
    %c1 = arith.constant 1 : index
    %c0_13 = arith.constant 0 : index
    %c0_14 = arith.constant 0 : index
    %45 = vector.load %arg14[%c1, %c0_13, %c0_14] : memref<4x8x8xbf16, #tpu.memory_space<vmem>>, vector<1x8x8xbf16>
    %46 = vector.shape_cast %45 : vector<1x8x8xbf16> to vector<8x8xbf16>
    %47 = vector.shape_cast %44 : vector<8x8xbf16> to vector<1x8x8xbf16>
    tpu.vector_store %arg14[%c1, %c0_13, %c0_14], %47 {strides = array<i32>} : memref<4x8x8xbf16, #tpu.memory_space<vmem>>, vector<1x8x8xbf16>,
    %48 = vector.extract_strided_slice %9 {offsets = [2, 0], sizes = [1, 32], strides = [1, 1]} : vector<4x32xf32> to vector<1x32xf32>
    %49 = vector.broadcast %48 : vector<1x32xf32> to vector<8x32xf32>
    %50 = arith.mulf %7, %49 : vector<8x32xf32>
    %51 = arith.truncf %50 : vector<8x32xf32> to vector<8x32xbf16>
    %cst_15 = arith.constant dense<0.000000e+00> : vector<8x8xf32>
    %52 = tpu.matmul %51, %8, %cst_15 {dimension_numbers = #tpu.dot_dimension_numbers<[1], [1], [0], [0], [0, 0, 1, 0], [], []>} : vector<8x32xbf16>, vector<8x32xbf16>, vector<8x8xf32> -> vector<8x8xf32>
    %cst_16 = arith.constant dense<0xFF800000> : vector<8xf32>
    %53 = vector.multi_reduction <maximumf>, %52, %cst_16 [1] : vector<8x8xf32> to vector<8xf32>
    %54 = vector.shape_cast %53 : vector<8xf32> to vector<8x1xf32>
    %55 = vector.broadcast %54 : vector<8x1xf32> to vector<8x8xf32>
    %56 = arith.subf %52, %55 : vector<8x8xf32>
    %57 = math.exp %56 : vector<8x8xf32>
    %cst_17 = arith.constant dense<0.000000e+00> : vector<8xf32>
    %58 = vector.multi_reduction <add>, %57, %cst_17 [1] : vector<8x8xf32> to vector<8xf32>
    %59 = vector.shape_cast %58 : vector<8xf32> to vector<8x1xf32>
    %60 = tpu.reciprocal %59 {approx = true} : vector<8x1xf32> -> vector<8x1xf32>
    %61 = vector.broadcast %60 : vector<8x1xf32> to vector<8x8xf32>
    %62 = arith.mulf %57, %61 : vector<8x8xf32>
    %63 = arith.truncf %62 : vector<8x8xf32> to vector<8x8xbf16>
    %c2 = arith.constant 2 : index
    %c0_18 = arith.constant 0 : index
    %c0_19 = arith.constant 0 : index
    %64 = vector.load %arg14[%c2, %c0_18, %c0_19] : memref<4x8x8xbf16, #tpu.memory_space<vmem>>, vector<1x8x8xbf16>
    %65 = vector.shape_cast %64 : vector<1x8x8xbf16> to vector<8x8xbf16>
    %66 = vector.shape_cast %63 : vector<8x8xbf16> to vector<1x8x8xbf16>
    tpu.vector_store %arg14[%c2, %c0_18, %c0_19], %66 {strides = array<i32>} : memref<4x8x8xbf16, #tpu.memory_space<vmem>>, vector<1x8x8xbf16>,
    %67 = vector.extract_strided_slice %9 {offsets = [3, 0], sizes = [1, 32], strides = [1, 1]} : vector<4x32xf32> to vector<1x32xf32>
    %68 = vector.broadcast %67 : vector<1x32xf32> to vector<8x32xf32>
    %69 = arith.mulf %7, %68 : vector<8x32xf32>
    %70 = arith.truncf %69 : vector<8x32xf32> to vector<8x32xbf16>
    %cst_20 = arith.constant dense<0.000000e+00> : vector<8x8xf32>
    %71 = tpu.matmul %70, %8, %cst_20 {dimension_numbers = #tpu.dot_dimension_numbers<[1], [1], [0], [0], [0, 0, 1, 0], [], []>} : vector<8x32xbf16>, vector<8x32xbf16>, vector<8x8xf32> -> vector<8x8xf32>
    %cst_21 = arith.constant dense<0xFF800000> : vector<8xf32>
    %72 = vector.multi_reduction <maximumf>, %71, %cst_21 [1] : vector<8x8xf32> to vector<8xf32>
    %73 = vector.shape_cast %72 : vector<8xf32> to vector<8x1xf32>
    %74 = vector.broadcast %73 : vector<8x1xf32> to vector<8x8xf32>
    %75 = arith.subf %71, %74 : vector<8x8xf32>
    %76 = math.exp %75 : vector<8x8xf32>
    %cst_22 = arith.constant dense<0.000000e+00> : vector<8xf32>
    %77 = vector.multi_reduction <add>, %76, %cst_22 [1] : vector<8x8xf32> to vector<8xf32>
    %78 = vector.shape_cast %77 : vector<8xf32> to vector<8x1xf32>
    %79 = tpu.reciprocal %78 {approx = true} : vector<8x1xf32> -> vector<8x1xf32>
    %80 = vector.broadcast %79 : vector<8x1xf32> to vector<8x8xf32>
    %81 = arith.mulf %76, %80 : vector<8x8xf32>
    %82 = arith.truncf %81 : vector<8x8xf32> to vector<8x8xbf16>
    %c3 = arith.constant 3 : index
    %c0_23 = arith.constant 0 : index
    %c0_24 = arith.constant 0 : index
    %83 = vector.load %arg14[%c3, %c0_23, %c0_24] : memref<4x8x8xbf16, #tpu.memory_space<vmem>>, vector<1x8x8xbf16>
    %84 = vector.shape_cast %83 : vector<1x8x8xbf16> to vector<8x8xbf16>
    %85 = vector.shape_cast %82 : vector<8x8xbf16> to vector<1x8x8xbf16>
    tpu.vector_store %arg14[%c3, %c0_23, %c0_24], %85 {strides = array<i32>} : memref<4x8x8xbf16, #tpu.memory_space<vmem>>, vector<1x8x8xbf16>,
    %c0_25 = arith.constant 0 : index
    %c0_26 = arith.constant 0 : index
    %c0_27 = arith.constant 0 : index
    %86 = vector.load %arg14[%c0_25, %c0_26, %c0_27] : memref<4x8x8xbf16, #tpu.memory_space<vmem>>, vector<1x8x8xbf16>
    %87 = vector.shape_cast %86 : vector<1x8x8xbf16> to vector<8x8xbf16>
    %88 = arith.extf %87 : vector<8x8xbf16> to vector<8x8xf32>
    %c0_28 = arith.constant 0 : index
    %c0_29 = arith.constant 0 : index
    %89 = memref.load %arg9[%c0_28, %c0_29] : memref<4x4xf32, #tpu.memory_space<smem>>
    %90 = vector.broadcast %89 : f32 to vector<8x8xf32>
    %91 = arith.mulf %88, %90 : vector<8x8xf32>
    %c1_30 = arith.constant 1 : index
    %c0_31 = arith.constant 0 : index
    %c0_32 = arith.constant 0 : index
    %92 = vector.load %arg14[%c1_30, %c0_31, %c0_32] : memref<4x8x8xbf16, #tpu.memory_space<vmem>>, vector<1x8x8xbf16>
    %93 = vector.shape_cast %92 : vector<1x8x8xbf16> to vector<8x8xbf16>
    %94 = arith.extf %93 : vector<8x8xbf16> to vector<8x8xf32>
    %c1_33 = arith.constant 1 : index
    %c0_34 = arith.constant 0 : index
    %95 = memref.load %arg9[%c1_33, %c0_34] : memref<4x4xf32, #tpu.memory_space<smem>>
    %96 = vector.broadcast %95 : f32 to vector<8x8xf32>
    %97 = arith.mulf %94, %96 : vector<8x8xf32>
    %98 = arith.addf %91, %97 : vector<8x8xf32>
    %c2_35 = arith.constant 2 : index
    %c0_36 = arith.constant 0 : index
    %c0_37 = arith.constant 0 : index
    %99 = vector.load %arg14[%c2_35, %c0_36, %c0_37] : memref<4x8x8xbf16, #tpu.memory_space<vmem>>, vector<1x8x8xbf16>
    %100 = vector.shape_cast %99 : vector<1x8x8xbf16> to vector<8x8xbf16>
    %101 = arith.extf %100 : vector<8x8xbf16> to vector<8x8xf32>
    %c2_38 = arith.constant 2 : index
    %c0_39 = arith.constant 0 : index
    %102 = memref.load %arg9[%c2_38, %c0_39] : memref<4x4xf32, #tpu.memory_space<smem>>
    %103 = vector.broadcast %102 : f32 to vector<8x8xf32>
    %104 = arith.mulf %101, %103 : vector<8x8xf32>
    %105 = arith.addf %98, %104 : vector<8x8xf32>
    %c3_40 = arith.constant 3 : index
    %c0_41 = arith.constant 0 : index
    %c0_42 = arith.constant 0 : index
    %106 = vector.load %arg14[%c3_40, %c0_41, %c0_42] : memref<4x8x8xbf16, #tpu.memory_space<vmem>>, vector<1x8x8xbf16>
    %107 = vector.shape_cast %106 : vector<1x8x8xbf16> to vector<8x8xbf16>
    %108 = arith.extf %107 : vector<8x8xbf16> to vector<8x8xf32>
    %c3_43 = arith.constant 3 : index
    %c0_44 = arith.constant 0 : index
    %109 = memref.load %arg9[%c3_43, %c0_44] : memref<4x4xf32, #tpu.memory_space<smem>>
    %110 = vector.broadcast %109 : f32 to vector<8x8xf32>
    %111 = arith.mulf %108, %110 : vector<8x8xf32>
    %112 = arith.addf %105, %111 : vector<8x8xf32>
    %113 = arith.truncf %112 : vector<8x8xf32> to vector<8x8xbf16>
    %c0_45 = arith.constant 0 : index
    %c0_46 = arith.constant 0 : index
    %c0_47 = arith.constant 0 : index
    %114 = vector.load %arg13[%c0_45, %c0_46, %c0_47] : memref<4x8x8xbf16, #tpu.memory_space<vmem>>, vector<1x8x8xbf16>
    %115 = vector.shape_cast %114 : vector<1x8x8xbf16> to vector<8x8xbf16>
    %cst_48 = arith.constant dense<0.000000e+00> : vector<8x8xf32>
    %116 = tpu.matmul %113, %115, %cst_48 {dimension_numbers = #tpu.dot_dimension_numbers<[1], [0], [0], [1], [0, 0, 1, 1], [], []>} : vector<8x8xbf16>, vector<8x8xbf16>, vector<8x8xf32> -> vector<8x8xf32>
    %117 = arith.truncf %116 : vector<8x8xf32> to vector<8x8xbf16>
    %c0_49 = arith.constant 0 : index
    %c0_50 = arith.constant 0 : index
    %118 = vector.load %arg15[%c0_49, %c0_50] : memref<8x32xbf16, #tpu.memory_space<vmem>>, vector<8x8xbf16>
    tpu.vector_store %arg15[%c0_49, %c0_50], %117 {strides = array<i32>} : memref<8x32xbf16, #tpu.memory_space<vmem>>, vector<8x8xbf16>,
    %c0_51 = arith.constant 0 : index
    %c0_52 = arith.constant 0 : index
    %c0_53 = arith.constant 0 : index
    %119 = vector.load %arg14[%c0_51, %c0_52, %c0_53] : memref<4x8x8xbf16, #tpu.memory_space<vmem>>, vector<1x8x8xbf16>
    %120 = vector.shape_cast %119 : vector<1x8x8xbf16> to vector<8x8xbf16>
    %121 = arith.extf %120 : vector<8x8xbf16> to vector<8x8xf32>
    %c0_54 = arith.constant 0 : index
    %c1_55 = arith.constant 1 : index
    %122 = memref.load %arg9[%c0_54, %c1_55] : memref<4x4xf32, #tpu.memory_space<smem>>
    %123 = vector.broadcast %122 : f32 to vector<8x8xf32>
    %124 = arith.mulf %121, %123 : vector<8x8xf32>
    %c1_56 = arith.constant 1 : index
    %c0_57 = arith.constant 0 : index
    %c0_58 = arith.constant 0 : index
    %125 = vector.load %arg14[%c1_56, %c0_57, %c0_58] : memref<4x8x8xbf16, #tpu.memory_space<vmem>>, vector<1x8x8xbf16>
    %126 = vector.shape_cast %125 : vector<1x8x8xbf16> to vector<8x8xbf16>
    %127 = arith.extf %126 : vector<8x8xbf16> to vector<8x8xf32>
    %c1_59 = arith.constant 1 : index
    %c1_60 = arith.constant 1 : index
    %128 = memref.load %arg9[%c1_59, %c1_60] : memref<4x4xf32, #tpu.memory_space<smem>>
    %129 = vector.broadcast %128 : f32 to vector<8x8xf32>
    %130 = arith.mulf %127, %129 : vector<8x8xf32>
    %131 = arith.addf %124, %130 : vector<8x8xf32>
    %c2_61 = arith.constant 2 : index
    %c0_62 = arith.constant 0 : index
    %c0_63 = arith.constant 0 : index
    %132 = vector.load %arg14[%c2_61, %c0_62, %c0_63] : memref<4x8x8xbf16, #tpu.memory_space<vmem>>, vector<1x8x8xbf16>
    %133 = vector.shape_cast %132 : vector<1x8x8xbf16> to vector<8x8xbf16>
    %134 = arith.extf %133 : vector<8x8xbf16> to vector<8x8xf32>
    %c2_64 = arith.constant 2 : index
    %c1_65 = arith.constant 1 : index
    %135 = memref.load %arg9[%c2_64, %c1_65] : memref<4x4xf32, #tpu.memory_space<smem>>
    %136 = vector.broadcast %135 : f32 to vector<8x8xf32>
    %137 = arith.mulf %134, %136 : vector<8x8xf32>
    %138 = arith.addf %131, %137 : vector<8x8xf32>
    %c3_66 = arith.constant 3 : index
    %c0_67 = arith.constant 0 : index
    %c0_68 = arith.constant 0 : index
    %139 = vector.load %arg14[%c3_66, %c0_67, %c0_68] : memref<4x8x8xbf16, #tpu.memory_space<vmem>>, vector<1x8x8xbf16>
    %140 = vector.shape_cast %139 : vector<1x8x8xbf16> to vector<8x8xbf16>
    %141 = arith.extf %140 : vector<8x8xbf16> to vector<8x8xf32>
    %c3_69 = arith.constant 3 : index
    %c1_70 = arith.constant 1 : index
    %142 = memref.load %arg9[%c3_69, %c1_70] : memref<4x4xf32, #tpu.memory_space<smem>>
    %143 = vector.broadcast %142 : f32 to vector<8x8xf32>
    %144 = arith.mulf %141, %143 : vector<8x8xf32>
    %145 = arith.addf %138, %144 : vector<8x8xf32>
    %146 = arith.truncf %145 : vector<8x8xf32> to vector<8x8xbf16>
    %c1_71 = arith.constant 1 : index
    %c0_72 = arith.constant 0 : index
    %c0_73 = arith.constant 0 : index
    %147 = vector.load %arg13[%c1_71, %c0_72, %c0_73] : memref<4x8x8xbf16, #tpu.memory_space<vmem>>, vector<1x8x8xbf16>
    %148 = vector.shape_cast %147 : vector<1x8x8xbf16> to vector<8x8xbf16>
    %cst_74 = arith.constant dense<0.000000e+00> : vector<8x8xf32>
    %149 = tpu.matmul %146, %148, %cst_74 {dimension_numbers = #tpu.dot_dimension_numbers<[1], [0], [0], [1], [0, 0, 1, 1], [], []>} : vector<8x8xbf16>, vector<8x8xbf16>, vector<8x8xf32> -> vector<8x8xf32>
    %150 = arith.truncf %149 : vector<8x8xf32> to vector<8x8xbf16>
    %c0_75 = arith.constant 0 : index
    %c8 = arith.constant 8 : index
    %151 = vector.load %arg15[%c0_75, %c8] : memref<8x32xbf16, #tpu.memory_space<vmem>>, vector<8x8xbf16>
    tpu.vector_store %arg15[%c0_75, %c8], %150 {strides = array<i32>} : memref<8x32xbf16, #tpu.memory_space<vmem>>, vector<8x8xbf16>,
    %c0_76 = arith.constant 0 : index
    %c0_77 = arith.constant 0 : index
    %c0_78 = arith.constant 0 : index
    %152 = vector.load %arg14[%c0_76, %c0_77, %c0_78] : memref<4x8x8xbf16, #tpu.memory_space<vmem>>, vector<1x8x8xbf16>
    %153 = vector.shape_cast %152 : vector<1x8x8xbf16> to vector<8x8xbf16>
    %154 = arith.extf %153 : vector<8x8xbf16> to vector<8x8xf32>
    %c0_79 = arith.constant 0 : index
    %c2_80 = arith.constant 2 : index
    %155 = memref.load %arg9[%c0_79, %c2_80] : memref<4x4xf32, #tpu.memory_space<smem>>
    %156 = vector.broadcast %155 : f32 to vector<8x8xf32>
    %157 = arith.mulf %154, %156 : vector<8x8xf32>
    %c1_81 = arith.constant 1 : index
    %c0_82 = arith.constant 0 : index
    %c0_83 = arith.constant 0 : index
    %158 = vector.load %arg14[%c1_81, %c0_82, %c0_83] : memref<4x8x8xbf16, #tpu.memory_space<vmem>>, vector<1x8x8xbf16>
    %159 = vector.shape_cast %158 : vector<1x8x8xbf16> to vector<8x8xbf16>
    %160 = arith.extf %159 : vector<8x8xbf16> to vector<8x8xf32>
    %c1_84 = arith.constant 1 : index
    %c2_85 = arith.constant 2 : index
    %161 = memref.load %arg9[%c1_84, %c2_85] : memref<4x4xf32, #tpu.memory_space<smem>>
    %162 = vector.broadcast %161 : f32 to vector<8x8xf32>
    %163 = arith.mulf %160, %162 : vector<8x8xf32>
    %164 = arith.addf %157, %163 : vector<8x8xf32>
    %c2_86 = arith.constant 2 : index
    %c0_87 = arith.constant 0 : index
    %c0_88 = arith.constant 0 : index
    %165 = vector.load %arg14[%c2_86, %c0_87, %c0_88] : memref<4x8x8xbf16, #tpu.memory_space<vmem>>, vector<1x8x8xbf16>
    %166 = vector.shape_cast %165 : vector<1x8x8xbf16> to vector<8x8xbf16>
    %167 = arith.extf %166 : vector<8x8xbf16> to vector<8x8xf32>
    %c2_89 = arith.constant 2 : index
    %c2_90 = arith.constant 2 : index
    %168 = memref.load %arg9[%c2_89, %c2_90] : memref<4x4xf32, #tpu.memory_space<smem>>
    %169 = vector.broadcast %168 : f32 to vector<8x8xf32>
    %170 = arith.mulf %167, %169 : vector<8x8xf32>
    %171 = arith.addf %164, %170 : vector<8x8xf32>
    %c3_91 = arith.constant 3 : index
    %c0_92 = arith.constant 0 : index
    %c0_93 = arith.constant 0 : index
    %172 = vector.load %arg14[%c3_91, %c0_92, %c0_93] : memref<4x8x8xbf16, #tpu.memory_space<vmem>>, vector<1x8x8xbf16>
    %173 = vector.shape_cast %172 : vector<1x8x8xbf16> to vector<8x8xbf16>
    %174 = arith.extf %173 : vector<8x8xbf16> to vector<8x8xf32>
    %c3_94 = arith.constant 3 : index
    %c2_95 = arith.constant 2 : index
    %175 = memref.load %arg9[%c3_94, %c2_95] : memref<4x4xf32, #tpu.memory_space<smem>>
    %176 = vector.broadcast %175 : f32 to vector<8x8xf32>
    %177 = arith.mulf %174, %176 : vector<8x8xf32>
    %178 = arith.addf %171, %177 : vector<8x8xf32>
    %179 = arith.truncf %178 : vector<8x8xf32> to vector<8x8xbf16>
    %c2_96 = arith.constant 2 : index
    %c0_97 = arith.constant 0 : index
    %c0_98 = arith.constant 0 : index
    %180 = vector.load %arg13[%c2_96, %c0_97, %c0_98] : memref<4x8x8xbf16, #tpu.memory_space<vmem>>, vector<1x8x8xbf16>
    %181 = vector.shape_cast %180 : vector<1x8x8xbf16> to vector<8x8xbf16>
    %cst_99 = arith.constant dense<0.000000e+00> : vector<8x8xf32>
    %182 = tpu.matmul %179, %181, %cst_99 {dimension_numbers = #tpu.dot_dimension_numbers<[1], [0], [0], [1], [0, 0, 1, 1], [], []>} : vector<8x8xbf16>, vector<8x8xbf16>, vector<8x8xf32> -> vector<8x8xf32>
    %183 = arith.truncf %182 : vector<8x8xf32> to vector<8x8xbf16>
    %c0_100 = arith.constant 0 : index
    %c16 = arith.constant 16 : index
    %184 = vector.load %arg15[%c0_100, %c16] : memref<8x32xbf16, #tpu.memory_space<vmem>>, vector<8x8xbf16>
    tpu.vector_store %arg15[%c0_100, %c16], %183 {strides = array<i32>} : memref<8x32xbf16, #tpu.memory_space<vmem>>, vector<8x8xbf16>,
    %c0_101 = arith.constant 0 : index
    %c0_102 = arith.constant 0 : index
    %c0_103 = arith.constant 0 : index
    %185 = vector.load %arg14[%c0_101, %c0_102, %c0_103] : memref<4x8x8xbf16, #tpu.memory_space<vmem>>, vector<1x8x8xbf16>
    %186 = vector.shape_cast %185 : vector<1x8x8xbf16> to vector<8x8xbf16>
    %187 = arith.extf %186 : vector<8x8xbf16> to vector<8x8xf32>
    %c0_104 = arith.constant 0 : index
    %c3_105 = arith.constant 3 : index
    %188 = memref.load %arg9[%c0_104, %c3_105] : memref<4x4xf32, #tpu.memory_space<smem>>
    %189 = vector.broadcast %188 : f32 to vector<8x8xf32>
    %190 = arith.mulf %187, %189 : vector<8x8xf32>
    %c1_106 = arith.constant 1 : index
    %c0_107 = arith.constant 0 : index
    %c0_108 = arith.constant 0 : index
    %191 = vector.load %arg14[%c1_106, %c0_107, %c0_108] : memref<4x8x8xbf16, #tpu.memory_space<vmem>>, vector<1x8x8xbf16>
    %192 = vector.shape_cast %191 : vector<1x8x8xbf16> to vector<8x8xbf16>
    %193 = arith.extf %192 : vector<8x8xbf16> to vector<8x8xf32>
    %c1_109 = arith.constant 1 : index
    %c3_110 = arith.constant 3 : index
    %194 = memref.load %arg9[%c1_109, %c3_110] : memref<4x4xf32, #tpu.memory_space<smem>>
    %195 = vector.broadcast %194 : f32 to vector<8x8xf32>
    %196 = arith.mulf %193, %195 : vector<8x8xf32>
    %197 = arith.addf %190, %196 : vector<8x8xf32>
    %c2_111 = arith.constant 2 : index
    %c0_112 = arith.constant 0 : index
    %c0_113 = arith.constant 0 : index
    %198 = vector.load %arg14[%c2_111, %c0_112, %c0_113] : memref<4x8x8xbf16, #tpu.memory_space<vmem>>, vector<1x8x8xbf16>
    %199 = vector.shape_cast %198 : vector<1x8x8xbf16> to vector<8x8xbf16>
    %200 = arith.extf %199 : vector<8x8xbf16> to vector<8x8xf32>
    %c2_114 = arith.constant 2 : index
    %c3_115 = arith.constant 3 : index
    %201 = memref.load %arg9[%c2_114, %c3_115] : memref<4x4xf32, #tpu.memory_space<smem>>
    %202 = vector.broadcast %201 : f32 to vector<8x8xf32>
    %203 = arith.mulf %200, %202 : vector<8x8xf32>
    %204 = arith.addf %197, %203 : vector<8x8xf32>
    %c3_116 = arith.constant 3 : index
    %c0_117 = arith.constant 0 : index
    %c0_118 = arith.constant 0 : index
    %205 = vector.load %arg14[%c3_116, %c0_117, %c0_118] : memref<4x8x8xbf16, #tpu.memory_space<vmem>>, vector<1x8x8xbf16>
    %206 = vector.shape_cast %205 : vector<1x8x8xbf16> to vector<8x8xbf16>
    %207 = arith.extf %206 : vector<8x8xbf16> to vector<8x8xf32>
    %c3_119 = arith.constant 3 : index
    %c3_120 = arith.constant 3 : index
    %208 = memref.load %arg9[%c3_119, %c3_120] : memref<4x4xf32, #tpu.memory_space<smem>>
    %209 = vector.broadcast %208 : f32 to vector<8x8xf32>
    %210 = arith.mulf %207, %209 : vector<8x8xf32>
    %211 = arith.addf %204, %210 : vector<8x8xf32>
    %212 = arith.truncf %211 : vector<8x8xf32> to vector<8x8xbf16>
    %c3_121 = arith.constant 3 : index
    %c0_122 = arith.constant 0 : index
    %c0_123 = arith.constant 0 : index
    %213 = vector.load %arg13[%c3_121, %c0_122, %c0_123] : memref<4x8x8xbf16, #tpu.memory_space<vmem>>, vector<1x8x8xbf16>
    %214 = vector.shape_cast %213 : vector<1x8x8xbf16> to vector<8x8xbf16>
    %cst_124 = arith.constant dense<0.000000e+00> : vector<8x8xf32>
    %215 = tpu.matmul %212, %214, %cst_124 {dimension_numbers = #tpu.dot_dimension_numbers<[1], [0], [0], [1], [0, 0, 1, 1], [], []>} : vector<8x8xbf16>, vector<8x8xbf16>, vector<8x8xf32> -> vector<8x8xf32>
    %216 = arith.truncf %215 : vector<8x8xf32> to vector<8x8xbf16>
    %c0_125 = arith.constant 0 : index
    %c24 = arith.constant 24 : index
    %217 = vector.load %arg15[%c0_125, %c24] : memref<8x32xbf16, #tpu.memory_space<vmem>>, vector<8x8xbf16>
    tpu.vector_store %arg15[%c0_125, %c24], %216 {strides = array<i32>} : memref<8x32xbf16, #tpu.memory_space<vmem>>, vector<8x8xbf16>,
    %c0_126 = arith.constant 0 : index
    %c0_127 = arith.constant 0 : index
    %218 = vector.load %arg15[%c0_126, %c0_127] : memref<8x32xbf16, #tpu.memory_space<vmem>>, vector<8x32xbf16>
    %c0_128 = arith.constant 0 : index
    %c0_129 = arith.constant 0 : index
    %219 = vector.load %arg6[%c0_128, %c0_129] : memref<32x32xbf16, #tpu.memory_space<vmem>>, vector<32x32xbf16>
    %cst_130 = arith.constant dense<0.000000e+00> : vector<8x32xf32>
    %220 = tpu.matmul %218, %219, %cst_130 {dimension_numbers = #tpu.dot_dimension_numbers<[1], [0], [0], [1], [0, 0, 1, 1], [], []>} : vector<8x32xbf16>, vector<32x32xbf16>, vector<8x32xf32> -> vector<8x32xf32>
    %c0_131 = arith.constant 0 : index
    %c0_132 = arith.constant 0 : index
    %221 = vector.load %arg7[%c0_131, %c0_132] : memref<1x32xf32, #tpu.memory_space<vmem>>, vector<1x32xf32>
    %222 = vector.broadcast %221 : vector<1x32xf32> to vector<8x32xf32>
    %223 = arith.addf %220, %222 : vector<8x32xf32>
    %c0_133 = arith.constant 0 : index
    %c0_134 = arith.constant 0 : index
    %c0_135 = arith.constant 0 : index
    %224 = vector.load %arg10[%c0_133, %c0_134, %c0_135] : memref<1x8x32xf32, #tpu.memory_space<vmem>>, vector<1x8x32xf32>
    %225 = vector.shape_cast %224 : vector<1x8x32xf32> to vector<8x32xf32>
    %226 = vector.shape_cast %223 : vector<8x32xf32> to vector<1x8x32xf32>
    tpu.vector_store %arg10[%c0_133, %c0_134, %c0_135], %226 {strides = array<i32>} : memref<1x8x32xf32, #tpu.memory_space<vmem>>, vector<1x8x32xf32>,
    return
  }
  func.func @transform_0(%arg0: i32, %arg1: i32) -> (i32, i32, i32) {
    %c0_i32 = arith.constant 0 : i32
    %c0_i32_0 = arith.constant 0 : i32
    %c0_i32_1 = arith.constant 0 : i32
    return %arg0, %c0_i32, %c0_i32_0 : i32, i32, i32
  }
  func.func @transform_1(%arg0: i32, %arg1: i32) -> (i32, i32) {
    %c0_i32 = arith.constant 0 : i32
    %c0_i32_0 = arith.constant 0 : i32
    %c0_i32_1 = arith.constant 0 : i32
    return %c0_i32, %c0_i32_0 : i32, i32
  }
  func.func @transform_2(%arg0: i32, %arg1: i32) -> (i32, i32) {
    %c0_i32 = arith.constant 0 : i32
    %c0_i32_0 = arith.constant 0 : i32
    %c0_i32_1 = arith.constant 0 : i32
    return %c0_i32, %c0_i32_0 : i32, i32
  }
  func.func @transform_3(%arg0: i32, %arg1: i32) -> (i32, i32) {
    %c0_i32 = arith.constant 0 : i32
    %c0_i32_0 = arith.constant 0 : i32
    %c0_i32_1 = arith.constant 0 : i32
    return %c0_i32, %c0_i32_0 : i32, i32
  }
  func.func @transform_4(%arg0: i32, %arg1: i32) -> (i32, i32) {
    %c0_i32 = arith.constant 0 : i32
    %c0_i32_0 = arith.constant 0 : i32
    %c0_i32_1 = arith.constant 0 : i32
    return %c0_i32, %c0_i32_0 : i32, i32
  }
  func.func @transform_5(%arg0: i32, %arg1: i32) -> (i32, i32) {
    %c0_i32 = arith.constant 0 : i32
    %c0_i32_0 = arith.constant 0 : i32
    %c0_i32_1 = arith.constant 0 : i32
    return %c0_i32, %c0_i32_0 : i32, i32
  }
  func.func @transform_6(%arg0: i32, %arg1: i32) -> (i32, i32) {
    %c0_i32 = arith.constant 0 : i32
    %c0_i32_0 = arith.constant 0 : i32
    %c0_i32_1 = arith.constant 0 : i32
    return %c0_i32, %c0_i32_0 : i32, i32
  }
  func.func @transform_7(%arg0: i32, %arg1: i32) -> (i32, i32) {
    %c0_i32 = arith.constant 0 : i32
    %c0_i32_0 = arith.constant 0 : i32
    %c0_i32_1 = arith.constant 0 : i32
    return %c0_i32, %c0_i32_0 : i32, i32
  }
  func.func @transform_8(%arg0: i32, %arg1: i32) -> (i32, i32, i32) {
    %c0_i32 = arith.constant 0 : i32
    %c0_i32_0 = arith.constant 0 : i32
    return %arg0, %arg1, %c0_i32 : i32, i32, i32
  }
}

</mosaic_0001>

<bundles_post_ra>
// kernel: tpu_custom_call.1
= control target key start
LH: loop header
LB: loop body
LE: loop exit
PB: predicated region body
PF: predicated region fallthrough
CT: control target
= control target key end

     0   :  { %s2217_s0 = inlined_call_operand.hbm [shape: f32[2,8,32], index: 0, kind: input, shape index: {}]   ;;  %s2218_s1 = inlined_call_operand.vmem [shape: f32[1,32], index: 1, kind: input, shape index: {}]   ;;  %s2219_s2 = inlined_call_operand.vmem [shape: f32[1,32], index: 2, kind: input, shape index: {}]   ;;  %s2220_s3 = inlined_call_operand.hbm [shape: bf16[32,96], index: 3, kind: input, shape index: {}]   ;;  %s2221_s4 = inlined_call_operand.hbm [shape: bf16[32,32], index: 4, kind: input, shape index: {}]   ;;  %s2222_s5 = inlined_call_operand.vmem [shape: f32[1,32], index: 5, kind: input, shape index: {}]   ;;  %s2223_s6 = inlined_call_operand.vmem [shape: f32[4,32], index: 6, kind: input, shape index: {}]   ;;  %s2224_s7 = inlined_call_operand.vmem [shape: f32[4,4], index: 7, kind: input, shape index: {}]   ;;  %s2225_s8 = inlined_call_operand.hbm [shape: f32[2,8,32], index: 8, kind: output, shape index: {}]  }
   0x1   :  { %2233 = sst [smem:[#allocation22_spill]] %s2222_s5 }
   0x2   :  { %2234 = sst [smem:[#allocation23_spill]] %s2224_s7 }
   0x3   :  { %2235 = sst [smem:[#allocation24_spill]] %s2225_s8 }
   0x4   :  { %13 = vsyncpa [#allocation8], 0 }
   0x5   :  { %15 = vsyncpa [#allocation8 + $0x1], 0 }
   0x6   :  { %16 = vsyncpa [#allocation12], 0 }
   0x7   :  { %17 = vsyncpa [#allocation10], 0 }
   0x8   :  { %18 = vsyncpa [#allocation9], 0 }
   0x9   :  { %20 = vsyncpa [#allocation9 + $0x1], 0  ;;  %s1810_s27 = smov 0   ;;  %s1812_s28 = smov 0  }
   0xa   :  { %s1814_s29 = smov 0   ;;  %s1816_s30 = smov 0  }
   0xb   :  { %s1818_s9 = smov 0   ;;  %s1820_s10 = smov 0  }
   0xc LB: > { %2236 = sst [smem:[#allocation20_spill]] %s1726_s27  ;;  %s1283_s11 = sadd.s32 4294967295, %s1746_s10   ;;  %s1746_s10 = sphi %s1820_s10, %s26_s10   ;;  %s1742_s9 = sphi %s1818_s9, %s2261_s9   ;;  %s1738_s30 = sphi %s1816_s30, %s2260_s30   ;;  %s1734_s29 = sphi %s1814_s29, %s2259_s29   ;;  %s1730_s28 = sphi %s1812_s28, %s2258_s28   ;;  %s1726_s27 = sphi %s1810_s27, %s2257_s27  }
   0xd   : > { %s1284_s12 = sadd.s32 4294967294, %s1746_s10   ;;  %p58_p0 = scmp.ne.s32.totalorder %s1730_s28, %s1726_s27 }
   0xe   : > { %p1844_p1 = scmp.eq.s32.totalorder %s1283_s11, 0  ;;  %p1848_p2 = scmp.eq.s32.totalorder %s1283_s11, 1 }
   0xf   : > { %p237_p3 = scmp.eq.s32.totalorder %s1284_s12, 1  ;;  %p1285_p5 = scmp.ge.s32.totalorder %s1746_s10, 1 }
  0x10   : > { %s2237_s13 = scalar_select %p1844_p1, 1, 0 }
  0x11   : > { %p1854_p4 = por %p1844_p1, %p58_p0  ;;  %p1859_p6 = por %p237_p3, %p58_p0 }
  0x12   : > { %p244_p7 = scmp.lt.s32.totalorder %s1746_s10, 3  ;;  %s1748_s18 = smov [#allocation11]  }
  0x13   : > { %s2239_s15 = scalar_select %p1854_p4, 1, 0 }
  0x14   : > { %s2240_s16 = scalar_select %p1859_p6, 1, 0 }
  0x15   : > { %p1864_p8 = pnand %p1285_p5, %p244_p7  ;;  %s262_s19 = sshll.u32 %s1748_s18, 4  ;;  %s1868_s19 = int_to_ptr.vmem [resolvable:$true] %s262_s19 }
  0x16   : > { %2241 = sst [smem:[#allocation21_spill]] %s2240_s16  ;;  %s1749_s21 = smov [#allocation13]  }
  0x17   : > { %p1444_p9 = pneg %p1864_p8  ;;  %s275_s22 = sshll.u32 %s1749_s21, 4  ;;  %s1879_s22 = int_to_ptr.vmem [resolvable:$true] %s275_s22 }
  0x18   : > { %s2244_s7 = sld [smem:[#allocation23_spill]]  ;;  %s1555_s12 = scalar_lea.hbm %s2220_s3, 256 }
  0x19   : > { %p1875_p11 = pnand %p1444_p9, %p1844_p1  ;;  %p1556_p12 = scmp.ne.s32.totalorder %s2220_s3, %s1555_s12 }
  0x1a   : > { %p1562_p5 = scmp.lt.u32.totalorder %s1555_s12, %s2220_s3 }
  0x1b   : > { %p1894_p13 = pneg %p1875_p11 }
  0x1d   : > { %p1558_p0 = pnand %p1894_p13, %p1556_p12 }
  0x1e   : > { %s295_s25 = sshll.u32 %s2244_s7, 4  ;;  %s1884_s25 = int_to_ptr.vmem [resolvable:$true] %s295_s25 }
  0x1f   : > { %p1559_p3 = pneg %p1558_p0 }
  0x21   : > { %p1564_p7 = pnand %p1562_p5, %p1559_p3 }
  0x23   : > { %1567 = shalt.err (!%p1564_p7)
}
  0x24   : > { %s1568_s16 = scalar_lea.vmem %s1868_s19, 256  ;;  %p1576_p1 = scmp.lt.s32.totalorder %s1868_s19, %s1868_s19 }
  0x25   : > { %p1569_p9 = scmp.ne.s32.totalorder %s1868_s19, %s1568_s16  ;;  %p1577_p4 = scmp.lt.s32.totalorder %s1568_s16, %s1568_s16 }
  0x27   : > { %p1571_p10 = pnand %p1569_p9, %p1894_p13  ;;  %p1578_p12 = por %p1577_p4, %p1576_p1 }
  0x29   : > { %p1572_p6 = pneg %p1571_p10 }
  0x2b   : > { %p1579_p0 = pnand %p1578_p12, %p1572_p6 }
  0x2d   : > { %1582 = shalt.err (!%p1579_p0)
}
  0x2e   : > { %s1750_s24 = smov 64   ;;  %s1751_s26 = smov 4  }
  0x2f   : > { %1447 = dma.hbm_to_vmem [thread:$0]  (!%p1875_p11), %s2220_s3, 256, %s1868_s19, [#allocation12], %s1750_s24, %s1750_s24, %s1751_s26  }
  0x30   : > { %s1583_s23 = scalar_lea.hbm %s2221_s4, 256 }
  0x31   : > { %p1584_p1 = scmp.ne.s32.totalorder %s2221_s4, %s1583_s23  ;;  %p1590_p10 = scmp.lt.u32.totalorder %s1583_s23, %s2221_s4 }
  0x33   : > { %p1586_p4 = pnand %p1584_p1, %p1894_p13 }
  0x35   : > { %p1587_p6 = pneg %p1586_p4 }
  0x37   : > { %p1592_p3 = pnand %p1590_p10, %p1587_p6 }
  0x39   : > { %1595 = shalt.err (!%p1592_p3)
}
  0x3a   : > { %s1596_s19 = scalar_lea.vmem %s1879_s22, 256  ;;  %p1604_p12 = scmp.lt.s32.totalorder %s1879_s22, %s1879_s22 }
  0x3b   : > { %p1597_p5 = scmp.ne.s32.totalorder %s1879_s22, %s1596_s19  ;;  %p1605_p0 = scmp.lt.s32.totalorder %s1596_s19, %s1596_s19 }
  0x3d   : > { %p1599_p7 = pnand %p1597_p5, %p1894_p13  ;;  %p1606_p1 = por %p1605_p0, %p1604_p12 }
  0x3f   : > { %p1600_p9 = pneg %p1599_p7 }
  0x41   : > { %p1607_p4 = pnand %p1606_p1, %p1600_p9 }
  0x43   : > { %1610 = shalt.err (!%p1607_p4)
}
  0x44   : > { %1450 = dma.hbm_to_vmem [thread:$0]  (!%p1875_p11), %s2221_s4, 256, %s1879_s22, [#allocation12], %s1750_s24, %s1750_s24, %s1751_s26  }
  0x45   : > { %s1611_s8 = scalar_lea.vmem %s1884_s25, 64  ;;  %p1619_p5 = scmp.lt.s32.totalorder %s1884_s25, %s1884_s25 }
  0x46   : > { %p1612_p6 = scmp.ne.s32.totalorder %s1884_s25, %s1611_s8  ;;  %p1620_p7 = scmp.lt.s32.totalorder %s1611_s8, %s1611_s8 }
  0x48   : > { %p1614_p10 = pnand %p1612_p6, %p1894_p13  ;;  %p1621_p9 = por %p1620_p7, %p1619_p5 }
  0x4a   : > { %p1615_p3 = pneg %p1614_p10 }
  0x4c   : > { %p1622_p12 = pnand %p1621_p9, %p1615_p3 }
  0x4e   : > { %1625 = shalt.err (!%p1622_p12)
}
  0x4f   : > { %s1752_s11 = smov [#allocation14]   ;;  %s45_s27 = sadd.s32 1, %s1734_s29 }
  0x50   : > { %1453 = dma.vmem_to_smem (!%p1875_p11), %s1884_s25, 64, %s1752_s11, [#allocation10]  }
  0x51   : > { %s38_s22 = sadd.s32 1, %s1742_s9  ;;  %p52_p13 = scmp.ne.s32.totalorder %s1734_s29, %s1730_s28 }
  0x52   : > { %p40_p0 = scmp.ge.s32.totalorder %s38_s22, 2  ;;  %p53_p1 = scmp.eq.s32.totalorder %s1746_s10, 0 }
  0x53   : > { %p1954_p4 = por %p1848_p2, %p52_p13  ;;  %p1465_p6 = scmp.lt.s32.totalorder %s1746_s10, 2 }
  0x54   : > { %s2263_s22 = smov (%p40_p0, %s38_s22), 0  ;;  %p54_p10 = por %p53_p1, %p52_p13 }
  0x55   : > { %s2246_s20 = scalar_select %p1954_p4, 1, 0 }
  0x56   : > { %s306_s24 = sand.u32 1, %s1734_s29   ;;  %s42_s26 = ssub.s32 %s1742_s9, %s2263_s22 }
  0x57   : > { %p43_p3 = scmp.eq.s32.totalorder %s42_s26, 0  ;;  %s1290_s25 = sshll.u32 %s306_s24, 3 }
  0x58   : > { %s1291_s12 = sshll.u32 %s1742_s9, 7  ;;  %s310_s16 = scalar_lea.vmem [#allocation7], %s1290_s25 }
  0x59   : > { %s1966_s18 = scalar_select %p43_p3, %s1734_s29, %s45_s27  }
  0x5a   : > { %s1971_s14 = scalar_lea.hbm %s2217_s0, %s1291_s12  ;;  %s317_s19 = sshll.u32 %s310_s16, 4  ;;  %s1973_s19 = int_to_ptr.vmem [resolvable:$true] %s317_s19 }
  0x5b   : > { %p1977_p2 = pnand %p1465_p6, %p54_p10  ;;  %s307_s7 = scalar_lea.sflag [#allocation8], %s306_s24 }
  0x5c   : > { %s1626_s8 = scalar_lea.hbm %s1971_s14, 128  ;;  %s1631_s26 = scalar_lea.hbm %s2217_s0, 256 }
  0x5d   : > { %p1627_p11 = scmp.ne.s32.totalorder %s1971_s14, %s1626_s8  ;;  %p1628_p5 = pneg %p1977_p2 }
  0x5e   : > { %p1632_p12 = scmp.lt.u32.totalorder %s1971_s14, %s2217_s0  ;;  %p1633_p13 = scmp.lt.u32.totalorder %s1631_s26, %s1626_s8 }
  0x5f   : > { %p1629_p7 = pnand %p1628_p5, %p1627_p11  ;;  %p1635_p1 = scmp.lt.u32.totalorder %s1626_s8, %s1971_s14 }
  0x60   : > { %p1634_p0 = por %p1633_p13, %p1632_p12 }
  0x61   : > { %p1630_p9 = pneg %p1629_p7 }
  0x62   : > { %p1636_p6 = por %p1635_p1, %p1634_p0 }
  0x64   : > { %p1637_p10 = pnand %p1636_p6, %p1630_p9 }
  0x66   : > { %1640 = shalt.err (!%p1637_p10)
}
  0x67   : > { %s1641_s24 = scalar_lea.vmem %s1973_s19, 128  ;;  %s1753_s21 = smov [#allocation7]  }
  0x68   : > { %p1642_p3 = scmp.ne.s32.totalorder %s1973_s19, %s1641_s24  ;;  %s1646_s23 = sshll.u32 %s1753_s21, 4  ;;  %s1647_s23 = int_to_ptr.vmem [resolvable:$false] %s1646_s23 }
  0x69   : > { %s1648_s16 = scalar_lea.vmem %s1647_s23, 256  ;;  %p1649_p4 = scmp.lt.s32.totalorder %s1973_s19, %s1647_s23 }
  0x6a   : > { %p1644_p11 = pnand %p1642_p3, %p1628_p5  ;;  %p1650_p12 = scmp.lt.s32.totalorder %s1648_s16, %s1641_s24 }
  0x6c   : > { %p1645_p7 = pneg %p1644_p11  ;;  %p1651_p13 = por %p1650_p12, %p1649_p4 }
  0x6e   : > { %p1652_p0 = pnand %p1651_p13, %p1645_p7 }
  0x70   : > { %1655 = shalt.err (!%p1652_p0)
}
  0x71   : > { %1457 = dma.hbm_to_vmem [thread:$0]  (!%p1977_p2), %s1971_s14, 128, %s1973_s19, %s307_s7  }
  0x72   : > { %326 = sbr.rel (%p1864_p8) target bundleno = 1922 (0x782), region = 52  ;;  %s2009_s8 = sand.u32 (!%p1864_p8), 1, %s1730_s28  }
  0x73   : > { %s1293_s11 = sshll.u32 (!%p1864_p8), %s2009_s8, 3  ;;  %s329_s27 = scalar_lea.sflag (!%p1864_p8), [#allocation8], %s2009_s8 }
  0x74   : > { %s332_s26 = scalar_lea.vmem (!%p1864_p8), [#allocation7], %s1293_s11  ;;  %p2248_p4 = scmp.ne.s32.totalorder (!%p1864_p8), %s2239_s15, 0 }
  0x79   : > { %1709 = dma.done.wait (%p2248_p4), %s329_s27, 128  }
  0x7a   : > { %1711 = vsyncadd (%p2248_p4), %s329_s27, 4294967168  ;;  %p2249_p2 = scmp.ne.s32.totalorder %s2237_s13, 0 }
  0x7c   : > { %1713 = dma.done.wait (%p2249_p2), [#allocation12], 512  }
  0x7d   : > { %1715 = vsyncadd (%p2249_p2), [#allocation12], 4294966784 }
  0x7e   : > { %1717 = dma.done.wait (%p2249_p2), [#allocation10], 64  }
  0x7f   : > { %1719 = vsyncadd (%p2249_p2), [#allocation10], 4294967232 }
  0x80   : > { %349 = sfence }
  0x81   : > { %v383_v0 = vld [vmem:[%s332_s26] sm:$0xff]  ;;  %vm384_vm0 = vcmask 261120   ;;  %v1533_v7 = vld [vmem:[#allocation11] sm:$0xff]   ;;  %v1754_v8 = vmov 0.0   ;;  %vm1755_vm1 = vmmov 0   ;;  %v1534_v9 = vld [vmem:[#allocation11 + $0x8] sm:$0xff]   ;;  %v514_v25 = vlaneseq }
  0x82   : > { %v385_v1 = vsel %vm384_vm0, %v383_v0, 0.0  ;;  %1364 = vmatprep.subr.bf16.mxu0 %v1754_v8  ;;  %1368 = vmatprep.mubr.msk.bf16.mxu0 %vm1755_vm1, %v1754_v8  ;;  %v1298_v14 = vld [vmem:[%s2218_s1] ss:$0 sm:$0xff]  ;;  %vm476_vm2 = vcmask 257024   ;;  %s1756_s19 = smov 96   ;;  %vm567_vm3 = vcmask 64512  }
  0x83   : > { %386 = vadd.xlane.f32.xlu0 %v385_v1  ;;  %1365 = vmatpush3.bf16.msra.mxu0 %v1533_v7  ;;  %v1299_v16 = vld [vmem:[%s2219_s2] ss:$0 sm:$0xff]  ;;  %v515_v26 = vshrl.u32 %v514_v25, 7  ;;  %s1757_s25 = smov 56   ;;  %s1758_s12 = smov 48   ;;  %vm488_vm4 = vcmask 60416  }
  0x84   : > { %1372 = vmatprep.subr.bf16.mxu1 %v1754_v8  ;;  %1366 = vmatprep.subr.bf16.mxu0 %v1754_v8  ;;  %v513_v31 = vld [vmem:[%s2223_s6] sm:$0xf]  ;;  %vm799_vm5 = vcmask 1043456   ;;  %s1759_s24 = smov 64   ;;  %s1760_s21 = smov 40   ;;  %vm924_vm6 = vcmask 126016  }
  0x85   : > { %1374 = vmatprep.mubr.msk.bf16.mxu1 %vm1755_vm1, %v1754_v8  ;;  %v516_v28 = vsub.s32 0, %v515_v26  ;;  %v584_v29 = vsub.s32 1, %v515_v26  ;;  %v647_v39 = vsub.s32 2, %v515_v26  ;;  %v710_v40 = vsub.s32 3, %v515_v26  ;;  %s2089_s23 = sld [smem:[#allocation14]]  ;;  %s2094_s27 = sld [smem:[#allocation14 + $0x1]] }
  0x86   : > { %s2091_s16 = sld [smem:[#allocation14 + $0x80]]  ;;  %s2096_s26 = sld [smem:[#allocation14 + $0x81]]  ;;  %vm1005_vm7 = vcmask 191616   ;;  %vm1086_vm8 = vcmask 257216  }
  0x87   : > { %1367 = vmatpush3.bf16.msra.mxu0 %v1534_v9  ;;  %v517_v33 = vrot.slane %v513_v31, %v516_v28  ;;  %v585_v34 = vrot.slane %v513_v31, %v584_v29  ;;  %v648_v43 = vrot.slane %v513_v31, %v647_v39  ;;  %v711_v44 = vrot.slane %v513_v31, %v710_v40  ;;  %s2098_s13 = sld [smem:[#allocation14 + $0x2]]  ;;  %s2102_s17 = sld [smem:[#allocation14 + $0x3]] }
  0x88   : > { %1378 = vmatprep.subr.bf16.mxu0 %v1754_v8  ;;  %s2100_s15 = sld [smem:[#allocation14 + $0x82]]  ;;  %s2104_s14 = sld [smem:[#allocation14 + $0x83]] }
  0x89   : > { %s2109_s5 = sld [smem:[#allocation14 + $0x180]]  ;;  %s2112_s7 = sld [smem:[#allocation14 + $0x101]] }
  0x8a   : > { %p2252_p5 = scmp.ne.s32.totalorder %s2246_s20, 0 }
 0x110   : > { %v387_v2 = vpop.xlane.xlu0 %386 }
 0x111   : > { %v389_v3 = vmul.f32 0.03125, %v387_v2 }
 0x113   : > { %v390_v4 = vsub.f32 %v383_v0, %v389_v3 }
 0x115   : > { %v391_v5 = vmul.f32 %v390_v4, %v390_v4 }
 0x117   : > { %v392_v6 = vsel %vm384_vm0, %v391_v5, 0.0 }
 0x118   : > { %393 = vadd.xlane.f32.xlu0 %v392_v6 }
 0x1a5   : > { %v394_v10 = vpop.xlane.xlu0 %393 }
 0x1a6   : > { %v395_v11 = vmul.f32 0.03125, %v394_v10 }
 0x1a8   : > { %v396_v12 = vadd.f32 1e-05, %v395_v11 }
 0x1aa   : > { %1537 = vrsqrt.f32 %v396_v12 }
 0x1b4   : > { %v1538_v13 = vpop.eup %1537 }
 0x1b5   : > { %v398_v15 = vmul.f32 %v1538_v13, %v390_v4 }
 0x1b7   : > { %v406_v17 = vmul.f32 %v1298_v14, %v398_v15 }
 0x1b9   : > { %v414_v18 = vadd.f32 %v1299_v16, %v406_v17 }
 0x1bb   : > { %v415_v19 = vpack.c.bf16 %v414_v18, %v414_v18 }
 0x1bd   : > { %1369 = vmatmul.mubr.msk.bf16.vlgmr.msra.gmra.mrb[0].mxu0 %vm384_vm0, %v415_v19 }
 0x1be   : > { %1380 = vmatprep.mubr.msk.bf16.mxu0 %vm1755_vm1, %v1754_v8 }
 0x290   : > { %v469_v20 = vpop.f32.mrb[0].mxu0 }
 0x291   : > { %v2046_v21 = vpack.c.bf16 %v469_v20, %v469_v20  ;;  %v1370_v22 = vpop.f32.mrb[1].mxu0 }
 0x292   : > { %v472_v23 = vpop.f32.mrb[2].mxu0 }
 0x293   : > { %481 = vrot.lane.b32.xlu1 %v2046_v21, %s1756_s19  ;;  %v1371_v24 = vpop.f32.mrb[3].mxu0  ;;  %477 = vst.msk [vmem:[#allocation2] sm:$0xf] %vm476_vm2, %v2046_v21  ;;  %s2107_s19 = sld [smem:[#allocation14 + $0x100]] }
 0x29a   : > { %v510_v30 = vld [vmem:[#allocation2] sm:$0xf] }
 0x29b   : > { %v511_v32 = vunpack.c.l.bf16 %v510_v30 }
 0x29d   : > { %v518_v37 = vmul.f32 %v517_v33, %v511_v32  ;;  %v586_v38 = vmul.f32 %v585_v34, %v511_v32  ;;  %v649_v45 = vmul.f32 %v648_v43, %v511_v32  ;;  %v712_v46 = vmul.f32 %v711_v44, %v511_v32 }
 0x29f   : > { %v519_v41 = vpack.c.bf16 %v518_v37, %v518_v37  ;;  %v587_v42 = vpack.c.bf16 %v586_v38, %v586_v38  ;;  %v650_v47 = vpack.c.bf16 %v649_v45, %v649_v45  ;;  %v713_v48 = vpack.c.bf16 %v712_v46, %v712_v46 }
 0x305   : > { %v482_v27 = vpop.permute.xlu1 %481 }
 0x306   : > { %484 = vst.msk [vmem:[#allocation3] sm:$0xf] %vm476_vm2, %v482_v27 }
 0x30d   : > { %v512_v35 = vld [vmem:[#allocation3] sm:$0xf] }
 0x30e   : > { %v525_v36 = vsel %vm384_vm0, %v512_v35, 0 }
 0x30f   : > { %1373 = vmatpush3.bf16.xpose.msra.mxu1 %v525_v36  ;;  %1379 = vmatpush3.bf16.xpose.msra.mxu0 %v525_v36 }
 0x310   : > { %1384 = vmatprep.subr.bf16.mxu1 %v1754_v8  ;;  %1390 = vmatprep.subr.bf16.mxu0 %v1754_v8 }
 0x316   : > { %1375 = vmatmul.mubr.msk.bf16.vlgmr.msra.gmra.mrb[0].mxu1 %vm384_vm0, %v519_v41  ;;  %1381 = vmatmul.mubr.msk.bf16.vlgmr.msra.gmra.mrb[4].mxu0 %vm384_vm0, %v587_v42 }
 0x317   : > { %1385 = vmatpush3.bf16.xpose.msra.mxu1 %v525_v36  ;;  %1391 = vmatpush3.bf16.xpose.msra.mxu0 %v525_v36 }
 0x318   : > { %1386 = vmatprep.mubr.msk.bf16.mxu1 %vm1755_vm1, %v1754_v8  ;;  %1392 = vmatprep.mubr.msk.bf16.mxu0 %vm1755_vm1, %v1754_v8 }
 0x319   : > { %1402 = vmatprep.subr.bf16.mxu0 %v1754_v8  ;;  %1396 = vmatprep.subr.bf16.mxu1 %v1754_v8 }
 0x31e   : > { %1387 = vmatmul.mubr.msk.bf16.vlgmr.msra.gmra.mrb[4].mxu1 %vm384_vm0, %v650_v47  ;;  %1393 = vmatmul.mubr.msk.bf16.vlgmr.msra.gmra.mrb[8].mxu0 %vm384_vm0, %v713_v48 }
 0x31f   : > { %1398 = vmatprep.mubr.msk.bf16.mxu1 %vm1755_vm1, %v1754_v8  ;;  %1404 = vmatprep.mubr.msk.bf16.mxu0 %vm1755_vm1, %v1754_v8 }
 0x3e9   : > { %v561_v49 = vpop.f32.mrb[0].mxu1  ;;  %v625_v50 = vpop.f32.mrb[4].mxu0 }
 0x3ea   : > { %v1376_v51 = vpop.f32.mrb[1].mxu1  ;;  %v1382_v52 = vpop.f32.mrb[5].mxu0  ;;  %v568_v53 = vsel %vm567_vm3, %v561_v49, -inf  ;;  %v631_v54 = vsel %vm567_vm3, %v625_v50, -inf }
 0x3eb   : > { %569 = vmax.xlane.f32.xlu1 %v568_v53  ;;  %v564_v55 = vpop.f32.mrb[2].mxu1  ;;  %632 = vmax.xlane.f32.xlu0 %v631_v54  ;;  %v628_v56 = vpop.f32.mrb[6].mxu0  ;;  %v774_v53 = vstv %s2089_s23  ;;  %v779_v54 = vstv %s2091_s16  ;;  %s2138_s23 = sld [smem:[#allocation14 + $0x183]]  ;;  %s1761_s16 = smov 8  }
 0x3ec   : > { %v1377_v57 = vpop.f32.mrb[3].mxu1  ;;  %v1383_v58 = vpop.f32.mrb[7].mxu0  ;;  %v848_v55 = vstv %s2094_s27  ;;  %v853_v56 = vstv %s2096_s26  ;;  %s1762_s27 = smov 16   ;;  %s1763_s26 = smov 24  }
 0x3f1   : > { %v688_v59 = vpop.f32.mrb[4].mxu1  ;;  %v751_v60 = vpop.f32.mrb[8].mxu0 }
 0x3f2   : > { %v1388_v61 = vpop.f32.mrb[5].mxu1  ;;  %v1394_v62 = vpop.f32.mrb[9].mxu0  ;;  %v694_v63 = vsel %vm567_vm3, %v688_v59, -inf  ;;  %v757_v4 = vsel %vm567_vm3, %v751_v60, -inf }
 0x3f3   : > { %v691_v0 = vpop.f32.mrb[6].mxu1  ;;  %695 = vmax.xlane.f32.xlu0 %v694_v63  ;;  %v754_v1 = vpop.f32.mrb[10].mxu0  ;;  %v929_v63 = vstv %s2098_s13 }
 0x3f4   : > { %v1389_v2 = vpop.f32.mrb[7].mxu1  ;;  %v1395_v3 = vpop.f32.mrb[11].mxu0  ;;  %v934_v1 = vstv %s2100_s15 }
 0x3f5   : > { %v785_v2 = vstv %s2107_s19  ;;  %v791_v3 = vstv %s2109_s5  ;;  %s377_s19 = scalar_lea.vmem [#allocation15], %s1293_s11 }
 0x3f6   : > { %s1171_s5 = sshll.u32 %s377_s19, 4  ;;  %s2169_s5 = int_to_ptr.vmem [resolvable:$true] %s1171_s5 }
 0x3f7   : > { %758 = vmax.xlane.f32.xlu0 %v757_v4  ;;  %v1010_v4 = vstv %s2102_s17  ;;  %s2250_s17 = sld [smem:[#allocation22_spill]]  ;;  %s1656_s11 = scalar_lea.vmem %s2169_s5, 128 }
 0x3f8   : > { %p1657_p8 = scmp.ne.s32.totalorder %s2169_s5, %s1656_s11 }
 0x3fa   : > { %p1658_p9 = pnand %p1657_p8, %p2252_p5 }
 0x3fc   : > { %490 = vrot.lane.b32.xlu1 %v2046_v21, %s1757_s25  ;;  %s2114_s25 = sld [smem:[#allocation14 + $0x181]]  ;;  %p1659_p1 = pneg %p1658_p9 }
 0x400   : > { %495 = vrot.lane.b32.xlu1 %v2046_v21, %s1758_s12  ;;  %s2117_s12 = sld [smem:[#allocation14 + $0x102]] }
 0x478   : > { %v570_v5 = vpop.xlane.xlu1 %569  ;;  %v633_v6 = vpop.xlane.xlu0 %632 }
 0x479   : > { %v571_v7 = vsub.f32 %v561_v49, %v570_v5  ;;  %v634_v9 = vsub.f32 %v625_v50, %v633_v6  ;;  %v1015_v5 = vstv %s2104_s14  ;;  %v859_v6 = vstv %s2112_s7  ;;  %s1335_s14 = sshll.u32 %s1738_s30, 7  ;;  %s1157_s30 = scalar_lea.sflag [#allocation9], %s2009_s8 }
 0x47b   : > { %v572_v10 = vmul.f32 1.442695, %v571_v7  ;;  %v635_v11 = vmul.f32 1.442695, %v634_v9  ;;  %v865_v7 = vstv %s2114_s25 }
 0x47c   : > { %v491_v12 = vpop.permute.xlu1 %490 }
 0x47d   : > { %1539 = vpow2.f32 %v572_v10  ;;  %494 = vst.msk [vmem:[#allocation4 + $0x4] sm:$0xf] %vm488_vm4, %v491_v12 }
 0x47e   : > { %1541 = vpow2.f32 %v635_v11 }
 0x480   : > { %v496_v13 = vpop.permute.xlu1 %495  ;;  %v696_v14 = vpop.xlane.xlu0 %695 }
 0x481   : > { %499 = vst.msk [vmem:[#allocation4 + $0x8] sm:$0xf] %vm488_vm4, %v496_v13  ;;  %v697_v15 = vsub.f32 %v688_v59, %v696_v14 }
 0x483   : > { %v698_v16 = vmul.f32 1.442695, %v697_v15 }
 0x484   : > { %v759_v17 = vpop.xlane.xlu0 %758  ;;  %v870_v18 = vld [vmem:[#allocation4 + $0x4] sm:$0xf] }
 0x485   : > { %1543 = vpow2.f32 %v698_v16  ;;  %v760_v19 = vsub.f32 %v751_v60, %v759_v17  ;;  %v875_v20 = vsel %vm799_vm5, %v870_v18, 0 }
 0x486   : > { %1403 = vmatpush3.bf16.msra.mxu0 %v875_v20  ;;  %v940_v20 = vstv %s2117_s12  ;;  %s2251_s12 = sld [smem:[#allocation24_spill]] }
 0x487   : > { %v1540_v22 = vpop.eup %1539  ;;  %v761_v23 = vmul.f32 1.442695, %v760_v19  ;;  %1414 = vmatprep.subr.bf16.mxu0 %v1754_v8 }
 0x488   : > { %v574_v24 = vsel %vm567_vm3, %v1540_v22, 0.0  ;;  %v1542_v25 = vpop.eup %1541 }
 0x489   : > { %1545 = vpow2.f32 %v761_v23  ;;  %575 = vadd.xlane.f32.xlu0 %v574_v24  ;;  %v637_v26 = vsel %vm567_vm3, %v1542_v25, 0.0 }
 0x48d   : > { %638 = vadd.xlane.f32.xlu0 %v637_v26 }
 0x48f   : > { %v1544_v27 = vpop.eup %1543 }
 0x490   : > { %v700_v28 = vsel %vm567_vm3, %v1544_v27, 0.0 }
 0x491   : > { %701 = vadd.xlane.f32.xlu0 %v700_v28 }
 0x493   : > { %v1546_v29 = vpop.eup %1545 }
 0x494   : > { %v763_v30 = vsel %vm567_vm3, %v1546_v29, 0.0 }
 0x495   : > { %764 = vadd.xlane.f32.xlu0 %v763_v30 }
 0x4ab   : > { %485 = vrot.lane.b32.xlu0 %v2046_v21, %s1759_s24  ;;  %s2119_s24 = sld [smem:[#allocation14 + $0x103]] }
 0x4af   : > { %500 = vrot.lane.b32.xlu0 %v2046_v21, %s1760_s21  ;;  %s2134_s21 = sld [smem:[#allocation14 + $0x182]] }
 0x516   : > { %v576_v31 = vpop.xlane.xlu0 %575 }
 0x517   : > { %1547 = vrcp.f32 %v576_v31 }
 0x51a   : > { %v639_v32 = vpop.xlane.xlu0 %638 }
 0x51b   : > { %1549 = vrcp.f32 %v639_v32 }
 0x51e   : > { %v702_v33 = vpop.xlane.xlu0 %701 }
 0x51f   : > { %1551 = vrcp.f32 %v702_v33 }
 0x521   : > { %v1548_v34 = vpop.eup %1547 }
 0x522   : > { %v578_v35 = vmul.f32 %v1548_v34, %v1540_v22  ;;  %v765_v36 = vpop.xlane.xlu0 %764  ;;  %v1021_v22 = vstv %s2119_s24  ;;  %s2167_s24 = scalar_lea.hbm %s2251_s12, %s1335_s14 }
 0x523   : > { %1553 = vrcp.f32 %v765_v36 }
 0x524   : > { %v579_v37 = vpack.c.bf16 %v578_v35, %v578_v35 }
 0x525   : > { %v1550_v38 = vpop.eup %1549 }
 0x526   : > { %581 = vst.msk [vmem:[#allocation5] sm:$0xf] %vm488_vm4, %v579_v37  ;;  %v641_v39 = vmul.f32 %v1550_v38, %v1542_v25  ;;  %v486_v40 = vpop.permute.xlu0 %485 }
 0x527   : > { %489 = vst.msk [vmem:[#allocation4] sm:$0xf] %vm488_vm4, %v486_v40 }
 0x528   : > { %v642_v41 = vpack.c.bf16 %v641_v39, %v641_v39 }
 0x529   : > { %v1552_v21 = vpop.eup %1551 }
 0x52a   : > { %644 = vst.msk [vmem:[#allocation5 + $0x4] sm:$0xf] %vm488_vm4, %v642_v41  ;;  %v704_v42 = vmul.f32 %v1552_v21, %v1544_v27  ;;  %v501_v43 = vpop.permute.xlu0 %500 }
 0x52b   : > { %504 = vst.msk [vmem:[#allocation4 + $0xc] sm:$0xf] %vm488_vm4, %v501_v43 }
 0x52c   : > { %v705_v44 = vpack.c.bf16 %v704_v42, %v704_v42 }
 0x52d   : > { %v1554_v45 = vpop.eup %1553 }
 0x52e   : > { %707 = vst.msk [vmem:[#allocation5 + $0x8] sm:$0xf] %vm488_vm4, %v705_v44  ;;  %v767_v46 = vmul.f32 %v1554_v45, %v1546_v29  ;;  %v795_v47 = vld [vmem:[#allocation4] sm:$0xf] }
 0x52f   : > { %v801_v48 = vsel %vm799_vm5, %v795_v47, 0  ;;  %v951_v47 = vld [vmem:[#allocation4 + $0x8] sm:$0xf] }
 0x530   : > { %v768_v49 = vpack.c.bf16 %v767_v46, %v767_v46  ;;  %1397 = vmatpush3.bf16.msra.mxu1 %v801_v48 }
 0x531   : > { %1408 = vmatprep.subr.bf16.mxu1 %v1754_v8  ;;  %v771_v50 = vld [vmem:[#allocation5] sm:$0xff]  }
 0x532   : > { %v845_v51 = vld [vmem:[#allocation5] sm:$0xff]   ;;  %770 = vst.msk [vmem:[#allocation5 + $0xc] sm:$0xf] %vm488_vm4, %v768_v49  ;;  %v772_v57 = vunpack.c.l.bf16 %v771_v50  ;;  %v777_v58 = vunpack.c.h.bf16 %v771_v50  ;;  %v1032_v48 = vld [vmem:[#allocation4 + $0xc] sm:$0xf]  ;;  %v946_v49 = vstv %s2134_s21  ;;  %v1027_v50 = vstv %s2138_s23  ;;  %s1764_s21 = smov [#allocation15]  }
 0x533   : > { %v926_v52 = vld [vmem:[#allocation5] sm:$0xff]   ;;  %v846_v59 = vunpack.c.l.bf16 %v845_v51  ;;  %v851_v60 = vunpack.c.h.bf16 %v845_v51  ;;  %s1660_s23 = sshll.u32 %s1764_s21, 4  ;;  %s1661_s23 = int_to_ptr.vmem [resolvable:$false] %s1660_s23 }
 0x534   : > { %v1007_v61 = vld [vmem:[#allocation5] sm:$0xff]   ;;  %v927_v62 = vunpack.c.l.bf16 %v926_v52  ;;  %v932_v0 = vunpack.c.h.bf16 %v926_v52  ;;  %v775_v11 = vmul.f32 %v774_v53, %v772_v57  ;;  %v780_v12 = vmul.f32 %v779_v54, %v777_v58  ;;  %p1663_p6 = scmp.lt.s32.totalorder %s2169_s5, %s1661_s23 }
 0x535   : > { %v1008_v9 = vunpack.c.l.bf16 %v1007_v61  ;;  %v1013_v10 = vunpack.c.h.bf16 %v1007_v61  ;;  %v849_v13 = vmul.f32 %v848_v55, %v846_v59  ;;  %v854_v14 = vmul.f32 %v853_v56, %v851_v60 }
 0x536   : > { %v930_v17 = vmul.f32 %v929_v63, %v927_v62  ;;  %v935_v18 = vmul.f32 %v934_v1, %v932_v0  ;;  %v781_v32 = vadd.f32 %v780_v12, %v775_v11  ;;  %v956_v55 = vsel %vm799_vm5, %v951_v47, 0  ;;  %v1535_v63 = vld [vmem:[#allocation13] sm:$0xff]  }
 0x537   : > { %v1011_v29 = vmul.f32 %v1010_v4, %v1008_v9  ;;  %v1016_v30 = vmul.f32 %v1015_v5, %v1013_v10  ;;  %v855_v34 = vadd.f32 %v854_v14, %v849_v13  ;;  %v1037_v56 = vsel %vm799_vm5, %v1032_v48, 0 }
 0x538   : > { %v936_v21 = vadd.f32 %v935_v18, %v930_v17 }
 0x539   : > { %v782_v15 = vld [vmem:[#allocation5 + $0x8] sm:$0xff]   ;;  %v1017_v42 = vadd.f32 %v1016_v30, %v1011_v29 }
 0x53a   : > { %v856_v16 = vld [vmem:[#allocation5 + $0x8] sm:$0xff]   ;;  %v783_v23 = vunpack.c.l.bf16 %v782_v15  ;;  %v789_v24 = vunpack.c.h.bf16 %v782_v15 }
 0x53b   : > { %v937_v19 = vld [vmem:[#allocation5 + $0x8] sm:$0xff]   ;;  %v857_v25 = vunpack.c.l.bf16 %v856_v16  ;;  %v863_v26 = vunpack.c.h.bf16 %v856_v16 }
 0x53c   : > { %v1018_v27 = vld [vmem:[#allocation5 + $0x8] sm:$0xff]   ;;  %v938_v28 = vunpack.c.l.bf16 %v937_v19  ;;  %v786_v33 = vmul.f32 %v785_v2, %v783_v23  ;;  %v792_v36 = vmul.f32 %v791_v3, %v789_v24  ;;  %v944_v45 = vunpack.c.h.bf16 %v937_v19 }
 0x53d   : > { %v1019_v31 = vunpack.c.l.bf16 %v1018_v27  ;;  %v860_v35 = vmul.f32 %v859_v6, %v857_v25  ;;  %v866_v37 = vmul.f32 %v865_v7, %v863_v26  ;;  %v1025_v46 = vunpack.c.h.bf16 %v1018_v27  ;;  %v1536_v6 = vld [vmem:[#allocation13 + $0x8] sm:$0xff]   ;;  %v1330_v26 = vld [vmem:[%s2250_s17] ss:$0 sm:$0xff] }
 0x53e   : > { %v787_v38 = vadd.f32 %v786_v33, %v781_v32  ;;  %v941_v40 = vmul.f32 %v940_v20, %v938_v28  ;;  %v947_v57 = vmul.f32 %v946_v49, %v944_v45 }
 0x53f   : > { %v861_v39 = vadd.f32 %v860_v35, %v855_v34  ;;  %v1022_v41 = vmul.f32 %v1021_v22, %v1019_v31  ;;  %v1028_v58 = vmul.f32 %v1027_v50, %v1025_v46 }
 0x540   : > { %v793_v43 = vadd.f32 %v792_v36, %v787_v38  ;;  %v942_v53 = vadd.f32 %v941_v40, %v936_v21 }
 0x541   : > { %v867_v44 = vadd.f32 %v866_v37, %v861_v39  ;;  %v1023_v54 = vadd.f32 %v1022_v41, %v1017_v42 }
 0x542   : > { %v794_v51 = vpack.c.bf16 %v793_v43, %v793_v43  ;;  %v948_v59 = vadd.f32 %v947_v57, %v942_v53 }
 0x543   : > { %v868_v52 = vpack.c.bf16 %v867_v44, %v867_v44  ;;  %v1029_v60 = vadd.f32 %v1028_v58, %v1023_v54 }
 0x544   : > { %1399 = vmatmul.mubr.msk.bf16.vlgmr.msra.gmra.mrb[8].mxu1 %vm567_vm3, %v794_v51  ;;  %v949_v61 = vpack.c.bf16 %v948_v59, %v948_v59 }
 0x545   : > { %1405 = vmatmul.mubr.msk.bf16.vlgmr.msra.gmra.mrb[12].mxu0 %vm567_vm3, %v868_v52  ;;  %1409 = vmatpush3.bf16.msra.mxu1 %v956_v55  ;;  %v1030_v62 = vpack.c.bf16 %v1029_v60, %v1029_v60 }
 0x546   : > { %1415 = vmatpush3.bf16.msra.mxu0 %v1037_v56  ;;  %1410 = vmatprep.mubr.msk.bf16.mxu1 %vm1755_vm1, %v1754_v8 }
 0x547   : > { %1416 = vmatprep.mubr.msk.bf16.mxu0 %vm1755_vm1, %v1754_v8  ;;  %1420 = vmatprep.subr.bf16.mxu1 %v1754_v8 }
 0x54c   : > { %1411 = vmatmul.mubr.msk.bf16.vlgmr.msra.gmra.mrb[12].mxu1 %vm567_vm3, %v949_v61 }
 0x54d   : > { %1417 = vmatmul.mubr.msk.bf16.vlgmr.msra.gmra.mrb[16].mxu0 %vm567_vm3, %v1030_v62  ;;  %1424 = vmatprep.mubr.msk.bf16.mxu1 %vm1755_vm1, %v1754_v8 }
 0x54e   : > { %1421 = vmatpush3.bf16.msra.mxu1 %v1535_v63 }
 0x54f   : > { %1422 = vmatprep.subr.bf16.mxu1 %v1754_v8 }
 0x552   : > { %1423 = vmatpush3.bf16.msra.mxu1 %v1536_v6 }
 0x617   : > { %v837_v0 = vpop.f32.mrb[8].mxu1 }
 0x618   : > { %v911_v1 = vpop.f32.mrb[12].mxu0  ;;  %v843_v2 = vpack.c.bf16 %v837_v0, %v837_v0  ;;  %v1400_v4 = vpop.f32.mrb[9].mxu1 }
 0x619   : > { %v1339_v3 = vpack.c.bf16 %v911_v1, %v911_v1  ;;  %v1406_v5 = vpop.f32.mrb[13].mxu0  ;;  %v840_v7 = vpop.f32.mrb[10].mxu1 }
 0x61a   : > { %v914_v9 = vpop.f32.mrb[14].mxu0  ;;  %844 = vst.msk [vmem:[#allocation6] sm:$0xf] %vm488_vm4, %v843_v2  ;;  %v1401_v10 = vpop.f32.mrb[11].mxu1 }
 0x61b   : > { %921 = vrot.lane.b32.xlu1 %v1339_v3, %s1761_s16  ;;  %v1407_v11 = vpop.f32.mrb[15].mxu0  ;;  %s1662_s16 = scalar_lea.vmem %s1661_s23, 256 }
 0x61c   : > { %p1664_p10 = scmp.lt.s32.totalorder %s1662_s16, %s1656_s11 }
 0x61e   : > { %p1665_p3 = por %p1664_p10, %p1663_p6 }
 0x61f   : > { %v992_v12 = vpop.f32.mrb[12].mxu1 }
 0x620   : > { %v1073_v13 = vpop.f32.mrb[16].mxu0  ;;  %v1340_v14 = vpack.c.bf16 %v992_v12, %v992_v12  ;;  %v1412_v16 = vpop.f32.mrb[13].mxu1  ;;  %p1666_p11 = pnand %p1665_p3, %p1659_p1 }
 0x621   : > { %v1341_v15 = vpack.c.bf16 %v1073_v13, %v1073_v13  ;;  %v1418_v17 = vpop.f32.mrb[17].mxu0  ;;  %v995_v18 = vpop.f32.mrb[14].mxu1 }
 0x622   : > { %v1076_v19 = vpop.f32.mrb[18].mxu0  ;;  %1002 = vrot.lane.b32.xlu0 %v1340_v14, %s1762_s27  ;;  %v1413_v20 = vpop.f32.mrb[15].mxu1 }
 0x623   : > { %1083 = vrot.lane.b32.xlu1 %v1341_v15, %s1763_s26  ;;  %v1419_v8 = vpop.f32.mrb[19].mxu0 }
 0x68d   : > { %v922_v22 = vpop.permute.xlu1 %921 }
 0x68e   : > { %925 = vst.msk [vmem:[#allocation6] sm:$0xf] %vm924_vm6, %v922_v22 }
 0x694   : > { %v1003_v23 = vpop.permute.xlu0 %1002 }
 0x695   : > { %v1084_v24 = vpop.permute.xlu1 %1083  ;;  %1006 = vst.msk [vmem:[#allocation6] sm:$0xf] %vm1005_vm7, %v1003_v23 }
 0x696   : > { %1087 = vst.msk [vmem:[#allocation6] sm:$0xf] %vm1086_vm8, %v1084_v24 }
 0x69d   : > { %v1088_v25 = vld [vmem:[#allocation6] sm:$0xf] }
 0x69e   : > { %1425 = vmatmul.mubr.msk.bf16.vlgmr.msra.gmra.mrb[16].mxu1 %vm384_vm0, %v1088_v25 }
 0x771   : > { %v1149_v27 = vpop.f32.mrb[16].mxu1 }
 0x772   : > { %v1150_v28 = vadd.f32 %v1330_v26, %v1149_v27  ;;  %v1426_v29 = vpop.f32.mrb[17].mxu1 }
 0x773   : > { %v1152_v30 = vpop.f32.mrb[18].mxu1 }
 0x774   : > { %v1427_v31 = vpop.f32.mrb[19].mxu1  ;;  %1155 = vst.msk [vmem:[%s377_s19] sm:$0xff] %vm384_vm0, %v1150_v28 }
 0x775   : > { %1669 = shalt.err (!%p1666_p11)
}
 0x776   : > { %s1670_s8 = scalar_lea.hbm %s2167_s24, 128  ;;  %s1674_s13 = scalar_lea.hbm %s2251_s12, 256 }
 0x777   : > { %p1671_p7 = scmp.ne.s32.totalorder %s2167_s24, %s1670_s8  ;;  %p1675_p0 = scmp.lt.u32.totalorder %s2167_s24, %s2251_s12 }
 0x778   : > { %p1676_p4 = scmp.lt.u32.totalorder %s1674_s13, %s1670_s8  ;;  %p1678_p8 = scmp.lt.u32.totalorder %s1670_s8, %s2167_s24 }
 0x779   : > { %p1672_p12 = pnand %p1671_p7, %p2252_p5 }
 0x77a   : > { %p1677_p2 = por %p1676_p4, %p1675_p0 }
 0x77b   : > { %p1673_p13 = pneg %p1672_p12 }
 0x77c   : > { %p1679_p9 = por %p1678_p8, %p1677_p2 }
 0x77e   : > { %p1680_p1 = pnand %p1679_p9, %p1673_p13 }
 0x780   : > { %1683 = shalt.err (!%p1680_p1)
}
 0x781   : > { %1442 = dma.vmem_to_hbm [thread:$0]  (%p2252_p5), %s2169_s5, 128, %s2167_s24, %s1157_s30  }
 0x782 PF: > { %s2253_s14 = sld [smem:[#allocation20_spill]]  ;;  %s2254_s19 = sld [smem:[#allocation21_spill]] }
 0x783   : > { %p2256_p10 = scmp.ge.s32.totalorder %s1746_s10, 2 }
 0x788   : > { %s1183_s7 = sand.u32 1, %s2253_s14   ;;  %p2255_p6 = scmp.ne.s32.totalorder %s2254_s19, 0 }
 0x789   : > { %s1184_s25 = scalar_lea.sflag [#allocation9], %s1183_s7 }
 0x78a   : > { %p1459_p3 = pnand %p2256_p10, %p2255_p6 }
 0x78c   : > { %1721 = dma.done.wait (!%p1459_p3), %s1184_s25, 128  }
 0x78d   : > { %1723 = vsyncadd (!%p1459_p3), %s1184_s25, 4294967168  ;;  %s26_s10 = sadd.s32 1, %s1746_s10   ;;  %s2257_s27 = smov %s1730_s28 }
 0x78e   : > { %p23_p11 = scmp.ge.s32.totalorder %s26_s10, 4   ;;  %s2258_s28 = smov %s1734_s29 }
 0x78f   : > { %s2259_s29 = smov %s1966_s18  ;;  %s2260_s30 = smov %s1742_s9 }
 0x790   : > { %s2261_s9 = smov %s2263_s22  ;;  %25 = sbr.rel (!%p23_p11) target bundleno = 12 (0xc), region = 124 }
 0x797   :  { %1189 = vsyncpa [#allocation8], 1 }
 0x798   :  { %1191 = vsyncpa [#allocation8 + $0x1], 1 }
 0x799   :  { %1192 = vsyncpa [#allocation12], 1 }
 0x79a   :  { %1193 = vsyncpa [#allocation9], 1 }
 0x79b   :  { %1195 = vsyncpa [#allocation9 + $0x1], 1 }
 0x79c   :  { %1196 = vsyncpa [#allocation10], 1 }
 0x79d   :  { %1198 = vsyncpa [#allocation10 + $0x1], 1 }

</bundles_post_ra>
